<compile_context>
chip_gen: v7x
topology: tpu7x:2x2x1
jax: 0.10.0
libtpu: 0.0.40
codegen_flags: <defaults>
</compile_context>

<pallas_src>
import functools

import jax
import jax.numpy as jnp
from jax.experimental import pallas as pl
from jax.experimental.pallas import tpu as pltpu

LN_EPS = 1e-5  # PyTorch nn.LayerNorm default


def _round_up(x, m):
    return (x + m - 1) // m * m


def _patch_embed_ln_kernel(x_ref, w_ref, b_ref, g_ref, beta_ref, o_ref, *, inv_h):
    # x_ref: (tile_n, Kp) bf16    w_ref: (Kp, Hp) bf16
    # b/g/beta: (1, Hp) f32       o_ref: (tile_n, Hp) out_dtype
    # Kp/Hp are multiples of 128; the pad columns of w/bias/gamma/beta are
    # zero, so they contribute 0 to acc and to the LN sums, and the LN
    # denominator is the *logical* hidden size -> pad columns are exact no-ops
    # and every store is an unmasked full-lane store.
    acc = jnp.dot(x_ref[...], w_ref[...], preferred_element_type=jnp.float32)
    acc = acc + b_ref[...]
    # Single-pass sum / sum-of-squares LayerNorm in f32.  Values here are O(1)
    # so the E[x^2] - mean^2 cancellation flagged in review is negligible; the
    # clamp keeps rsqrt finite for all-zero (row-padded) rows.
    s = jnp.sum(acc, axis=-1, keepdims=True)
    ss = jnp.sum(acc * acc, axis=-1, keepdims=True)
    mean = s * inv_h
    var = jnp.maximum(ss * inv_h - mean * mean, 0.0)
    normed = (acc - mean) * jax.lax.rsqrt(var + LN_EPS)
    o_ref[...] = (normed * g_ref[...] + beta_ref[...]).astype(o_ref.dtype)


def _choose_tile_n(n):
    """Row-tile size.

    16-aligned (bf16 native (16,128) vreg tile).  Small problems (<=512 rows)
    run as a single grid step; larger ones use 256-aligned tiles (v6e/v7x MXU
    M dim) up to 1024 rows, which also guarantees >=2 grid steps of >=256 rows
    so the v7x megacore split stays profitable.
    """
    if n <= 512:
        return max(16, _round_up(n, 16))
    return min(1024, _round_up(pl.cdiv(n, 2), 256))


def _vmem_need_bytes(tile_n, k_pad, h_pad, out_bytes):
    # Double-buffered streamed operands (input rows, output rows) plus the
    # grid-invariant weights / LN vectors (counted double-buffered: default).
    stream = 2 * tile_n * (k_pad * 2 + h_pad * out_bytes)
    invariant = 2 * (k_pad * h_pad * 2 + 3 * h_pad * 4)
    return stream + invariant


def patch_embed_layernorm(patches, w_mat, bias, gamma, beta, hidden, *,
                          out_dtype=jnp.bfloat16):
    """Fused (patches @ w_mat + bias) -> LayerNorm over the logical `hidden`.

    patches: (N, Kp) bf16, w_mat: (Kp, Hp) bf16, bias/gamma/beta: (1, Hp) f32,
    with Kp / Hp multiples of 128 (zero-padded).  Returns (N, Hp) out_dtype.
    """
    n, k_pad = patches.shape
    h_pad = w_mat.shape[1]

    tile_n = _choose_tile_n(n)
    n_pad = _round_up(n, tile_n)
    if n_pad != n:
        patches = jnp.pad(patches, ((0, n_pad - n), (0, 0)))

    out_bytes = jnp.dtype(out_dtype).itemsize
    need = _vmem_need_bytes(tile_n, k_pad, h_pad, out_bytes)
    # Raise the scoped-VMEM limit only when the 32 MiB default is too small;
    # stay below v7x's 64 MiB physical VMEM.
    vmem_limit = None
    if need > 32 * 1024 * 1024:
        vmem_limit = min(int(need * 5 // 4), 60 * 1024 * 1024)

    kernel = functools.partial(_patch_embed_ln_kernel, inv_h=1.0 / hidden)

    # NOTE: w_mat/bias/gamma/beta are grid-invariant; pipeline_mode=
    # pl.Buffered(1) on their specs would drop their second VMEM buffer --
    # worth adding for v7x (64 MiB VMEM) if K / tile_n are scaled up further.
    out = pl.pallas_call(
        kernel,
        out_shape=jax.ShapeDtypeStruct((n_pad, h_pad), out_dtype),
        grid_spec=pltpu.PrefetchScalarGridSpec(
            num_scalar_prefetch=0,
            grid=(n_pad // tile_n,),
            in_specs=[
                pl.BlockSpec((tile_n, k_pad), lambda i: (i, 0)),
                pl.BlockSpec((k_pad, h_pad), lambda i: (0, 0)),
                pl.BlockSpec((1, h_pad), lambda i: (0, 0)),
                pl.BlockSpec((1, h_pad), lambda i: (0, 0)),
                pl.BlockSpec((1, h_pad), lambda i: (0, 0)),
            ],
            out_specs=pl.BlockSpec((tile_n, h_pad), lambda i: (i, 0)),
        ),
        compiler_params=pltpu.CompilerParams(
            dimension_semantics=("parallel",),
            vmem_limit_bytes=vmem_limit),
    )(patches, w_mat, bias, gamma, beta)

    return out[:n] if n_pad != n else out


def tokenize_one_view(x, conv_w, conv_b, gamma, beta, patch_thw, *,
                      compute_dtype=jnp.bfloat16, out_dtype=jnp.bfloat16,
                      keep_padded_hidden=False):
    """One view: non-overlapping Conv3d patchify + rearrange + LayerNorm.

    x:       (b, t, c, h, w)           float32
    conv_w:  (hidden, c, pt, ph, pw)   Conv3d weight (kernel == stride)
    conv_b:  (hidden,)                 Conv3d bias
    gamma, beta: (hidden,)             LayerNorm affine params
    returns: (b, T', H'*W', hidden)    (or hidden padded to 128 if
                                        keep_padded_hidden=True)
    """
    b, t, c, h, w = x.shape
    pt, ph, pw = patch_thw
    hidden = conv_w.shape[0]
    tn, hn, wn = t // pt, h // ph, w // pw
    n_rows = b * tn * hn * wn
    K = c * pt * ph * pw
    k_pad = _round_up(K, 128)
    h_pad = _round_up(hidden, 128)

    # 'b t c h w -> b c t h w' + non-overlapping patch extraction; the bf16
    # cast is fused into the same transpose so the (N, Kp) matrix hits HBM
    # only once, at half width (see module-level TODO about full fusion).
    xt = jnp.transpose(x, (0, 2, 1, 3, 4))                        # (b,c,t,h,w)
    xr = xt.reshape(b, c, tn, pt, hn, ph, wn, pw)
    patches = jnp.transpose(xr, (0, 2, 4, 6, 1, 3, 5, 7))         # patch order
    patches = patches.reshape(n_rows, K).astype(compute_dtype)
    if k_pad != K:
        # Lane-dense LHS: zero-pad the contraction dim (exact for the matmul).
        patches = jnp.pad(patches, ((0, 0), (0, k_pad - K)))

    # Conv3d(kernel==stride, pad=0) == per-patch linear projection; pad both
    # the contraction dim and the hidden dim to lane-dense 128 multiples.
    w_mat = conv_w.reshape(hidden, K).T.astype(compute_dtype)      # (K, hidden)
    w_mat = jnp.pad(w_mat, ((0, k_pad - K), (0, h_pad - hidden)))
    bias = jnp.pad(conv_b.astype(jnp.float32),
                   (0, h_pad - hidden)).reshape(1, h_pad)
    g = jnp.pad(gamma.astype(jnp.float32),
                (0, h_pad - hidden)).reshape(1, h_pad)
    bta = jnp.pad(beta.astype(jnp.float32),
                  (0, h_pad - hidden)).reshape(1, h_pad)

    out = patch_embed_layernorm(patches, w_mat, bias, g, bta, hidden,
                                out_dtype=out_dtype)
    # 'b c t h w -> b t (h w) c'
    out = out.reshape(b, tn, hn * wn, h_pad)
    if keep_padded_hidden:
        return out  # zero pad-columns; skips the extra output pass of the slice
    return out[..., :hidden]


def cross_three_view_tokenize(x, params, patch_sizes):
    """Full forward: three independent views of the same input.

    jit this whole function (done in __main__) so the three pallas_calls are
    scheduled back-to-back and fixed launch costs are amortized.
    """
    outputs = []
    for i in range(len(params)):
        conv_w, conv_b, gamma, beta = params[i]
        outputs.append(
            tokenize_one_view(x, conv_w, conv_b, gamma, beta, patch_sizes[i]))
    return outputs


# ---- plain-JAX reference (validation only) ---------------------------------
def _reference_one_view(x, conv_w, conv_b, gamma, beta, patch_thw,
                        quantize=None):
    xq, wq = x, conv_w
    if quantize is not None:
        # Apply the same intentional input quantization the kernel uses for
        # its bf16 matmul inputs (accumulation stays f32 in both).
        xq = x.astype(quantize).astype(jnp.float32)
        wq = conv_w.astype(quantize).astype(jnp.float32)
    xt = jnp.transpose(xq, (0, 2, 1, 3, 4))                       # b c t h w
    out = jax.lax.conv_general_dilated(
        xt, wq, window_strides=patch_thw, padding="VALID",
        dimension_numbers=("NCDHW", "OIDHW", "NCDHW"),
        precision=jax.lax.Precision.HIGHEST)
    out = out + conv_b.reshape(1, -1, 1, 1, 1)
    out = jnp.transpose(out, (0, 2, 3, 4, 1))                     # b t h w c
    b, tn, hn, wn, hdn = out.shape
    out = out.reshape(b, tn, hn * wn, hdn)
    mean = out.mean(-1, keepdims=True)
    var = ((out - mean) ** 2).mean(-1, keepdims=True)
    return (out - mean) / jnp.sqrt(var + LN_EPS) * gamma + beta


if __name__ == "__main__":
    key = jax.random.PRNGKey(0)

    # Small shapes consistent with the module: x is (b, t, c=3, h, w).
    b, t, c, h, w = 2, 8, 3, 16, 16

    # Three "view_configs": (patch_t, patch_h, patch_w), hidden_size.
    patch_sizes = [(2, 4, 4), (4, 8, 8), (2, 8, 8)]
    hidden_sizes = [32, 64, 48]

    # Deterministic parameter init (synthetic, not a checkpoint load).
    params = []
    for i, ((pt, ph, pw), hidden) in enumerate(zip(patch_sizes, hidden_sizes)):
        kw, kb = jax.random.split(jax.random.fold_in(key, i))
        fan_in = c * pt * ph * pw
        conv_w = (jax.random.normal(kw, (hidden, c, pt, ph, pw), jnp.float32)
                  * (1.0 / jnp.sqrt(fan_in)))
        conv_b = jax.random.normal(kb, (hidden,), jnp.float32) * 0.01
        gamma = jnp.ones((hidden,), jnp.float32)   # LayerNorm weight init
        beta = jnp.zeros((hidden,), jnp.float32)   # LayerNorm bias init
        params.append((conv_w, conv_b, gamma, beta))

    x = jax.random.normal(jax.random.fold_in(key, 100),
                          (b, t, c, h, w), jnp.float32)

    fwd = jax.jit(functools.partial(cross_three_view_tokenize,
                                    patch_sizes=patch_sizes))
    outs = fwd(x, params)
    outs = [jax.block_until_ready(o) for o in outs]

    for i in range(3):
        out_f32 = outs[i].astype(jnp.float32)
        # Tight check against a reference with the same bf16 input
        # quantization (validates matmul + bias + LayerNorm logic; the kernel
        # additionally rounds its output to bf16).
        ref_q = _reference_one_view(x, *params[i], patch_sizes[i],
                                    quantize=jnp.bfloat16)
        assert out_f32.shape == ref_q.shape, (out_f32.shape, ref_q.shape)
        assert jnp.allclose(out_f32, ref_q, atol=3e-2, rtol=3e-2), (
            f"view {i} mismatch vs bf16-quantized ref: max err "
            f"{jnp.max(jnp.abs(out_f32 - ref_q))}")
        # Loose sanity check against the pure f32 module semantics (the gap is
        # the documented bf16 quantization of matmul inputs and the output).
        ref_f32 = _reference_one_view(x, *params[i], patch_sizes[i])
        assert jnp.allclose(out_f32, ref_f32, atol=2e-1, rtol=2e-1), (
            f"view {i} mismatch vs f32 ref: max err "
            f"{jnp.max(jnp.abs(out_f32 - ref_f32))}")

    print("KERNEL_OK")
</pallas_src>

<mosaic_0001>
module attributes {stable_mosaic.version = 11 : i64} {
  func.func @_patch_embed_ln_kernel(%arg0: i32, %arg1: memref<32x384xbf16, #tpu.memory_space<vmem>>, %arg2: memref<384x128xbf16, #tpu.memory_space<vmem>>, %arg3: memref<1x128xf32, #tpu.memory_space<vmem>>, %arg4: memref<1x128xf32, #tpu.memory_space<vmem>>, %arg5: memref<1x128xf32, #tpu.memory_space<vmem>>, %arg6: memref<32x128xbf16, #tpu.memory_space<vmem>>) attributes {dimension_semantics = [#tpu.dimension_semantics<parallel>], iteration_bounds = array<i64: 1>, scalar_prefetch = 0 : i64, scratch_operands = 0 : i64, tpu.core_type = #tpu.core_type<tc>, window_params = [{transform_indices = @transform_0, window_bounds = array<i64: 32, 384>}, {pipeline_mode = #tpu.pipeline_mode<synchronous>, transform_indices = @transform_1, window_bounds = array<i64: 384, 128>}, {pipeline_mode = #tpu.pipeline_mode<synchronous>, transform_indices = @transform_2, window_bounds = array<i64: 1, 128>}, {pipeline_mode = #tpu.pipeline_mode<synchronous>, transform_indices = @transform_3, window_bounds = array<i64: 1, 128>}, {pipeline_mode = #tpu.pipeline_mode<synchronous>, transform_indices = @transform_4, window_bounds = array<i64: 1, 128>}, {transform_indices = @transform_5, window_bounds = array<i64: 32, 128>}]} {
    %c0 = arith.constant 0 : index
    %c0_0 = arith.constant 0 : index
    %0 = vector.load %arg1[%c0, %c0_0] : memref<32x384xbf16, #tpu.memory_space<vmem>>, vector<32x384xbf16>
    %c0_1 = arith.constant 0 : index
    %c0_2 = arith.constant 0 : index
    %1 = vector.load %arg2[%c0_1, %c0_2] : memref<384x128xbf16, #tpu.memory_space<vmem>>, vector<384x128xbf16>
    %cst = arith.constant dense<0.000000e+00> : vector<32x128xf32>
    %2 = tpu.matmul %0, %1, %cst {dimension_numbers = #tpu.dot_dimension_numbers<[1], [0], [0], [1], [0, 0, 1, 1], [], []>} : vector<32x384xbf16>, vector<384x128xbf16>, vector<32x128xf32> -> vector<32x128xf32>
    %c0_3 = arith.constant 0 : index
    %c0_4 = arith.constant 0 : index
    %3 = vector.load %arg3[%c0_3, %c0_4] : memref<1x128xf32, #tpu.memory_space<vmem>>, vector<1x128xf32>
    %4 = vector.broadcast %3 : vector<1x128xf32> to vector<32x128xf32>
    %5 = arith.addf %2, %4 : vector<32x128xf32>
    %cst_5 = arith.constant dense<0.000000e+00> : vector<32xf32>
    %6 = vector.multi_reduction <add>, %5, %cst_5 [1] : vector<32x128xf32> to vector<32xf32>
    %7 = vector.shape_cast %6 : vector<32xf32> to vector<32x1xf32>
    %8 = arith.mulf %5, %5 : vector<32x128xf32>
    %cst_6 = arith.constant dense<0.000000e+00> : vector<32xf32>
    %9 = vector.multi_reduction <add>, %8, %cst_6 [1] : vector<32x128xf32> to vector<32xf32>
    %10 = vector.shape_cast %9 : vector<32xf32> to vector<32x1xf32>
    %cst_7 = arith.constant 0.020833334 : f32
    %11 = vector.broadcast %cst_7 : f32 to vector<32x1xf32>
    %12 = arith.mulf %7, %11 : vector<32x1xf32>
    %cst_8 = arith.constant 0.020833334 : f32
    %13 = vector.broadcast %cst_8 : f32 to vector<32x1xf32>
    %14 = arith.mulf %10, %13 : vector<32x1xf32>
    %15 = arith.mulf %12, %12 : vector<32x1xf32>
    %16 = arith.subf %14, %15 : vector<32x1xf32>
    %cst_9 = arith.constant 0.000000e+00 : f32
    %17 = vector.broadcast %cst_9 : f32 to vector<32x1xf32>
    %18 = arith.maximumf %16, %17 : vector<32x1xf32>
    %19 = vector.broadcast %12 : vector<32x1xf32> to vector<32x128xf32>
    %20 = arith.subf %5, %19 : vector<32x128xf32>
    %cst_10 = arith.constant 9.99999974E-6 : f32
    %21 = vector.broadcast %cst_10 : f32 to vector<32x1xf32>
    %22 = arith.addf %18, %21 : vector<32x1xf32>
    %23 = math.rsqrt %22 : vector<32x1xf32>
    %24 = vector.broadcast %23 : vector<32x1xf32> to vector<32x128xf32>
    %25 = arith.mulf %20, %24 : vector<32x128xf32>
    %c0_11 = arith.constant 0 : index
    %c0_12 = arith.constant 0 : index
    %26 = vector.load %arg4[%c0_11, %c0_12] : memref<1x128xf32, #tpu.memory_space<vmem>>, vector<1x128xf32>
    %27 = vector.broadcast %26 : vector<1x128xf32> to vector<32x128xf32>
    %28 = arith.mulf %25, %27 : vector<32x128xf32>
    %c0_13 = arith.constant 0 : index
    %c0_14 = arith.constant 0 : index
    %29 = vector.load %arg5[%c0_13, %c0_14] : memref<1x128xf32, #tpu.memory_space<vmem>>, vector<1x128xf32>
    %30 = vector.broadcast %29 : vector<1x128xf32> to vector<32x128xf32>
    %31 = arith.addf %28, %30 : vector<32x128xf32>
    %32 = arith.truncf %31 : vector<32x128xf32> to vector<32x128xbf16>
    %c0_15 = arith.constant 0 : index
    %c0_16 = arith.constant 0 : index
    %33 = vector.load %arg6[%c0_15, %c0_16] : memref<32x128xbf16, #tpu.memory_space<vmem>>, vector<32x128xbf16>
    tpu.vector_store %arg6[%c0_15, %c0_16], %32 {strides = array<i32>} : memref<32x128xbf16, #tpu.memory_space<vmem>>, vector<32x128xbf16>,
    return
  }
  func.func @transform_0(%arg0: i32) -> (i32, i32) {
    %c0_i32 = arith.constant 0 : i32
    %c0_i32_0 = arith.constant 0 : i32
    return %arg0, %c0_i32 : i32, i32
  }
  func.func @transform_1(%arg0: i32) -> (i32, i32) {
    %c0_i32 = arith.constant 0 : i32
    %c0_i32_0 = arith.constant 0 : i32
    %c0_i32_1 = arith.constant 0 : i32
    return %c0_i32, %c0_i32_0 : i32, i32
  }
  func.func @transform_2(%arg0: i32) -> (i32, i32) {
    %c0_i32 = arith.constant 0 : i32
    %c0_i32_0 = arith.constant 0 : i32
    %c0_i32_1 = arith.constant 0 : i32
    return %c0_i32, %c0_i32_0 : i32, i32
  }
  func.func @transform_3(%arg0: i32) -> (i32, i32) {
    %c0_i32 = arith.constant 0 : i32
    %c0_i32_0 = arith.constant 0 : i32
    %c0_i32_1 = arith.constant 0 : i32
    return %c0_i32, %c0_i32_0 : i32, i32
  }
  func.func @transform_4(%arg0: i32) -> (i32, i32) {
    %c0_i32 = arith.constant 0 : i32
    %c0_i32_0 = arith.constant 0 : i32
    %c0_i32_1 = arith.constant 0 : i32
    return %c0_i32, %c0_i32_0 : i32, i32
  }
  func.func @transform_5(%arg0: i32) -> (i32, i32) {
    %c0_i32 = arith.constant 0 : i32
    %c0_i32_0 = arith.constant 0 : i32
    return %arg0, %c0_i32 : i32, i32
  }
}

module attributes {stable_mosaic.version = 11 : i64} {
  func.func @_patch_embed_ln_kernel(%arg0: i32, %arg1: memref<16x768xbf16, #tpu.memory_space<vmem>>, %arg2: memref<768x128xbf16, #tpu.memory_space<vmem>>, %arg3: memref<1x128xf32, #tpu.memory_space<vmem>>, %arg4: memref<1x128xf32, #tpu.memory_space<vmem>>, %arg5: memref<1x128xf32, #tpu.memory_space<vmem>>, %arg6: memref<16x128xbf16, #tpu.memory_space<vmem>>) attributes {dimension_semantics = [#tpu.dimension_semantics<parallel>], iteration_bounds = array<i64: 1>, scalar_prefetch = 0 : i64, scratch_operands = 0 : i64, tpu.core_type = #tpu.core_type<tc>, window_params = [{transform_indices = @transform_0, window_bounds = array<i64: 16, 768>}, {pipeline_mode = #tpu.pipeline_mode<synchronous>, transform_indices = @transform_1, window_bounds = array<i64: 768, 128>}, {pipeline_mode = #tpu.pipeline_mode<synchronous>, transform_indices = @transform_2, window_bounds = array<i64: 1, 128>}, {pipeline_mode = #tpu.pipeline_mode<synchronous>, transform_indices = @transform_3, window_bounds = array<i64: 1, 128>}, {pipeline_mode = #tpu.pipeline_mode<synchronous>, transform_indices = @transform_4, window_bounds = array<i64: 1, 128>}, {transform_indices = @transform_5, window_bounds = array<i64: 16, 128>}]} {
    %c0 = arith.constant 0 : index
    %c0_0 = arith.constant 0 : index
    %0 = vector.load %arg1[%c0, %c0_0] : memref<16x768xbf16, #tpu.memory_space<vmem>>, vector<16x768xbf16>
    %c0_1 = arith.constant 0 : index
    %c0_2 = arith.constant 0 : index
    %1 = vector.load %arg2[%c0_1, %c0_2] : memref<768x128xbf16, #tpu.memory_space<vmem>>, vector<768x128xbf16>
    %cst = arith.constant dense<0.000000e+00> : vector<16x128xf32>
    %2 = tpu.matmul %0, %1, %cst {dimension_numbers = #tpu.dot_dimension_numbers<[1], [0], [0], [1], [0, 0, 1, 1], [], []>} : vector<16x768xbf16>, vector<768x128xbf16>, vector<16x128xf32> -> vector<16x128xf32>
    %c0_3 = arith.constant 0 : index
    %c0_4 = arith.constant 0 : index
    %3 = vector.load %arg3[%c0_3, %c0_4] : memref<1x128xf32, #tpu.memory_space<vmem>>, vector<1x128xf32>
    %4 = vector.broadcast %3 : vector<1x128xf32> to vector<16x128xf32>
    %5 = arith.addf %2, %4 : vector<16x128xf32>
    %cst_5 = arith.constant dense<0.000000e+00> : vector<16xf32>
    %6 = vector.multi_reduction <add>, %5, %cst_5 [1] : vector<16x128xf32> to vector<16xf32>
    %7 = vector.shape_cast %6 : vector<16xf32> to vector<16x1xf32>
    %8 = arith.mulf %5, %5 : vector<16x128xf32>
    %cst_6 = arith.constant dense<0.000000e+00> : vector<16xf32>
    %9 = vector.multi_reduction <add>, %8, %cst_6 [1] : vector<16x128xf32> to vector<16xf32>
    %10 = vector.shape_cast %9 : vector<16xf32> to vector<16x1xf32>
    %cst_7 = arith.constant 1.562500e-02 : f32
    %11 = vector.broadcast %cst_7 : f32 to vector<16x1xf32>
    %12 = arith.mulf %7, %11 : vector<16x1xf32>
    %cst_8 = arith.constant 1.562500e-02 : f32
    %13 = vector.broadcast %cst_8 : f32 to vector<16x1xf32>
    %14 = arith.mulf %10, %13 : vector<16x1xf32>
    %15 = arith.mulf %12, %12 : vector<16x1xf32>
    %16 = arith.subf %14, %15 : vector<16x1xf32>
    %cst_9 = arith.constant 0.000000e+00 : f32
    %17 = vector.broadcast %cst_9 : f32 to vector<16x1xf32>
    %18 = arith.maximumf %16, %17 : vector<16x1xf32>
    %19 = vector.broadcast %12 : vector<16x1xf32> to vector<16x128xf32>
    %20 = arith.subf %5, %19 : vector<16x128xf32>
    %cst_10 = arith.constant 9.99999974E-6 : f32
    %21 = vector.broadcast %cst_10 : f32 to vector<16x1xf32>
    %22 = arith.addf %18, %21 : vector<16x1xf32>
    %23 = math.rsqrt %22 : vector<16x1xf32>
    %24 = vector.broadcast %23 : vector<16x1xf32> to vector<16x128xf32>
    %25 = arith.mulf %20, %24 : vector<16x128xf32>
    %c0_11 = arith.constant 0 : index
    %c0_12 = arith.constant 0 : index
    %26 = vector.load %arg4[%c0_11, %c0_12] : memref<1x128xf32, #tpu.memory_space<vmem>>, vector<1x128xf32>
    %27 = vector.broadcast %26 : vector<1x128xf32> to vector<16x128xf32>
    %28 = arith.mulf %25, %27 : vector<16x128xf32>
    %c0_13 = arith.constant 0 : index
    %c0_14 = arith.constant 0 : index
    %29 = vector.load %arg5[%c0_13, %c0_14] : memref<1x128xf32, #tpu.memory_space<vmem>>, vector<1x128xf32>
    %30 = vector.broadcast %29 : vector<1x128xf32> to vector<16x128xf32>
    %31 = arith.addf %28, %30 : vector<16x128xf32>
    %32 = arith.truncf %31 : vector<16x128xf32> to vector<16x128xbf16>
    %c0_15 = arith.constant 0 : index
    %c0_16 = arith.constant 0 : index
    %33 = vector.load %arg6[%c0_15, %c0_16] : memref<16x128xbf16, #tpu.memory_space<vmem>>, vector<16x128xbf16>
    tpu.vector_store %arg6[%c0_15, %c0_16], %32 {strides = array<i32>} : memref<16x128xbf16, #tpu.memory_space<vmem>>, vector<16x128xbf16>,
    return
  }
  func.func @transform_0(%arg0: i32) -> (i32, i32) {
    %c0_i32 = arith.constant 0 : i32
    %c0_i32_0 = arith.constant 0 : i32
    return %arg0, %c0_i32 : i32, i32
  }
  func.func @transform_1(%arg0: i32) -> (i32, i32) {
    %c0_i32 = arith.constant 0 : i32
    %c0_i32_0 = arith.constant 0 : i32
    %c0_i32_1 = arith.constant 0 : i32
    return %c0_i32, %c0_i32_0 : i32, i32
  }
  func.func @transform_2(%arg0: i32) -> (i32, i32) {
    %c0_i32 = arith.constant 0 : i32
    %c0_i32_0 = arith.constant 0 : i32
    %c0_i32_1 = arith.constant 0 : i32
    return %c0_i32, %c0_i32_0 : i32, i32
  }
  func.func @transform_3(%arg0: i32) -> (i32, i32) {
    %c0_i32 = arith.constant 0 : i32
    %c0_i32_0 = arith.constant 0 : i32
    %c0_i32_1 = arith.constant 0 : i32
    return %c0_i32, %c0_i32_0 : i32, i32
  }
  func.func @transform_4(%arg0: i32) -> (i32, i32) {
    %c0_i32 = arith.constant 0 : i32
    %c0_i32_0 = arith.constant 0 : i32
    %c0_i32_1 = arith.constant 0 : i32
    return %c0_i32, %c0_i32_0 : i32, i32
  }
  func.func @transform_5(%arg0: i32) -> (i32, i32) {
    %c0_i32 = arith.constant 0 : i32
    %c0_i32_0 = arith.constant 0 : i32
    return %arg0, %c0_i32 : i32, i32
  }
}

module attributes {stable_mosaic.version = 11 : i64} {
  func.func @_patch_embed_ln_kernel(%arg0: i32, %arg1: memref<128x128xbf16, #tpu.memory_space<vmem>>, %arg2: memref<128x128xbf16, #tpu.memory_space<vmem>>, %arg3: memref<1x128xf32, #tpu.memory_space<vmem>>, %arg4: memref<1x128xf32, #tpu.memory_space<vmem>>, %arg5: memref<1x128xf32, #tpu.memory_space<vmem>>, %arg6: memref<128x128xbf16, #tpu.memory_space<vmem>>) attributes {dimension_semantics = [#tpu.dimension_semantics<parallel>], iteration_bounds = array<i64: 1>, scalar_prefetch = 0 : i64, scratch_operands = 0 : i64, tpu.core_type = #tpu.core_type<tc>, window_params = [{transform_indices = @transform_0, window_bounds = array<i64: 128, 128>}, {pipeline_mode = #tpu.pipeline_mode<synchronous>, transform_indices = @transform_1, window_bounds = array<i64: 128, 128>}, {pipeline_mode = #tpu.pipeline_mode<synchronous>, transform_indices = @transform_2, window_bounds = array<i64: 1, 128>}, {pipeline_mode = #tpu.pipeline_mode<synchronous>, transform_indices = @transform_3, window_bounds = array<i64: 1, 128>}, {pipeline_mode = #tpu.pipeline_mode<synchronous>, transform_indices = @transform_4, window_bounds = array<i64: 1, 128>}, {transform_indices = @transform_5, window_bounds = array<i64: 128, 128>}]} {
    %c0 = arith.constant 0 : index
    %c0_0 = arith.constant 0 : index
    %0 = vector.load %arg1[%c0, %c0_0] : memref<128x128xbf16, #tpu.memory_space<vmem>>, vector<128x128xbf16>
    %c0_1 = arith.constant 0 : index
    %c0_2 = arith.constant 0 : index
    %1 = vector.load %arg2[%c0_1, %c0_2] : memref<128x128xbf16, #tpu.memory_space<vmem>>, vector<128x128xbf16>
    %cst = arith.constant dense<0.000000e+00> : vector<128x128xf32>
    %2 = tpu.matmul %0, %1, %cst {dimension_numbers = #tpu.dot_dimension_numbers<[1], [0], [0], [1], [0, 0, 1, 1], [], []>} : vector<128x128xbf16>, vector<128x128xbf16>, vector<128x128xf32> -> vector<128x128xf32>
    %c0_3 = arith.constant 0 : index
    %c0_4 = arith.constant 0 : index
    %3 = vector.load %arg3[%c0_3, %c0_4] : memref<1x128xf32, #tpu.memory_space<vmem>>, vector<1x128xf32>
    %4 = vector.broadcast %3 : vector<1x128xf32> to vector<128x128xf32>
    %5 = arith.addf %2, %4 : vector<128x128xf32>
    %cst_5 = arith.constant dense<0.000000e+00> : vector<128xf32>
    %6 = vector.multi_reduction <add>, %5, %cst_5 [1] : vector<128x128xf32> to vector<128xf32>
    %7 = vector.shape_cast %6 : vector<128xf32> to vector<128x1xf32>
    %8 = arith.mulf %5, %5 : vector<128x128xf32>
    %cst_6 = arith.constant dense<0.000000e+00> : vector<128xf32>
    %9 = vector.multi_reduction <add>, %8, %cst_6 [1] : vector<128x128xf32> to vector<128xf32>
    %10 = vector.shape_cast %9 : vector<128xf32> to vector<128x1xf32>
    %cst_7 = arith.constant 3.125000e-02 : f32
    %11 = vector.broadcast %cst_7 : f32 to vector<128x1xf32>
    %12 = arith.mulf %7, %11 : vector<128x1xf32>
    %cst_8 = arith.constant 3.125000e-02 : f32
    %13 = vector.broadcast %cst_8 : f32 to vector<128x1xf32>
    %14 = arith.mulf %10, %13 : vector<128x1xf32>
    %15 = arith.mulf %12, %12 : vector<128x1xf32>
    %16 = arith.subf %14, %15 : vector<128x1xf32>
    %cst_9 = arith.constant 0.000000e+00 : f32
    %17 = vector.broadcast %cst_9 : f32 to vector<128x1xf32>
    %18 = arith.maximumf %16, %17 : vector<128x1xf32>
    %19 = vector.broadcast %12 : vector<128x1xf32> to vector<128x128xf32>
    %20 = arith.subf %5, %19 : vector<128x128xf32>
    %cst_10 = arith.constant 9.99999974E-6 : f32
    %21 = vector.broadcast %cst_10 : f32 to vector<128x1xf32>
    %22 = arith.addf %18, %21 : vector<128x1xf32>
    %23 = math.rsqrt %22 : vector<128x1xf32>
    %24 = vector.broadcast %23 : vector<128x1xf32> to vector<128x128xf32>
    %25 = arith.mulf %20, %24 : vector<128x128xf32>
    %c0_11 = arith.constant 0 : index
    %c0_12 = arith.constant 0 : index
    %26 = vector.load %arg4[%c0_11, %c0_12] : memref<1x128xf32, #tpu.memory_space<vmem>>, vector<1x128xf32>
    %27 = vector.broadcast %26 : vector<1x128xf32> to vector<128x128xf32>
    %28 = arith.mulf %25, %27 : vector<128x128xf32>
    %c0_13 = arith.constant 0 : index
    %c0_14 = arith.constant 0 : index
    %29 = vector.load %arg5[%c0_13, %c0_14] : memref<1x128xf32, #tpu.memory_space<vmem>>, vector<1x128xf32>
    %30 = vector.broadcast %29 : vector<1x128xf32> to vector<128x128xf32>
    %31 = arith.addf %28, %30 : vector<128x128xf32>
    %32 = arith.truncf %31 : vector<128x128xf32> to vector<128x128xbf16>
    %c0_15 = arith.constant 0 : index
    %c0_16 = arith.constant 0 : index
    %33 = vector.load %arg6[%c0_15, %c0_16] : memref<128x128xbf16, #tpu.memory_space<vmem>>, vector<128x128xbf16>
    tpu.vector_store %arg6[%c0_15, %c0_16], %32 {strides = array<i32>} : memref<128x128xbf16, #tpu.memory_space<vmem>>, vector<128x128xbf16>,
    return
  }
  func.func @transform_0(%arg0: i32) -> (i32, i32) {
    %c0_i32 = arith.constant 0 : i32
    %c0_i32_0 = arith.constant 0 : i32
    return %arg0, %c0_i32 : i32, i32
  }
  func.func @transform_1(%arg0: i32) -> (i32, i32) {
    %c0_i32 = arith.constant 0 : i32
    %c0_i32_0 = arith.constant 0 : i32
    %c0_i32_1 = arith.constant 0 : i32
    return %c0_i32, %c0_i32_0 : i32, i32
  }
  func.func @transform_2(%arg0: i32) -> (i32, i32) {
    %c0_i32 = arith.constant 0 : i32
    %c0_i32_0 = arith.constant 0 : i32
    %c0_i32_1 = arith.constant 0 : i32
    return %c0_i32, %c0_i32_0 : i32, i32
  }
  func.func @transform_3(%arg0: i32) -> (i32, i32) {
    %c0_i32 = arith.constant 0 : i32
    %c0_i32_0 = arith.constant 0 : i32
    %c0_i32_1 = arith.constant 0 : i32
    return %c0_i32, %c0_i32_0 : i32, i32
  }
  func.func @transform_4(%arg0: i32) -> (i32, i32) {
    %c0_i32 = arith.constant 0 : i32
    %c0_i32_0 = arith.constant 0 : i32
    %c0_i32_1 = arith.constant 0 : i32
    return %c0_i32, %c0_i32_0 : i32, i32
  }
  func.func @transform_5(%arg0: i32) -> (i32, i32) {
    %c0_i32 = arith.constant 0 : i32
    %c0_i32_0 = arith.constant 0 : i32
    return %arg0, %c0_i32 : i32, i32
  }
}

</mosaic_0001>

<bundles_post_ra>
// kernel: cross_three_view_tokenize.5
= control target key start
LH: loop header
LB: loop body
LE: loop exit
PB: predicated region body
PF: predicated region fallthrough
CT: control target
= control target key end

     0   :  { %s806_s0 = inlined_call_operand.vmem [shape: bf16[32,384], index: 0, kind: input, shape index: {}]   ;;  %s807_s1 = inlined_call_operand.vmem [shape: bf16[384,128], index: 1, kind: input, shape index: {}]   ;;  %s808_s2 = inlined_call_operand.vmem [shape: f32[1,128], index: 2, kind: input, shape index: {}]   ;;  %s809_s3 = inlined_call_operand.vmem [shape: f32[1,128], index: 3, kind: input, shape index: {}]   ;;  %s810_s4 = inlined_call_operand.vmem [shape: f32[1,128], index: 4, kind: input, shape index: {}]   ;;  %s811_s5 = inlined_call_operand.hbm [shape: bf16[32,128], index: 5, kind: output, shape index: {}]  }
   0x1   :  { %v586_v0 = vld [vmem:[%s807_s1 + $0x40] sm:$0xff]   ;;  %v589_v3 = vld [vmem:[%s807_s1 + $0x48] sm:$0xff]   ;;  %v592_v6 = vld [vmem:[%s807_s1 + $0x50] sm:$0xff]  }
   0x2   :  { %v587_v1 = vld [vmem:[%s807_s1] sm:$0xff]   ;;  %525 = vmatprep.subr.bf16.mxu0 %v586_v0  ;;  %v590_v4 = vld [vmem:[%s807_s1 + $0x8] sm:$0xff]   ;;  %v593_v7 = vld [vmem:[%s807_s1 + $0x10] sm:$0xff]  }
   0x3   :  { %v588_v2 = vld [vmem:[%s807_s1 + $0x80] sm:$0xff]   ;;  %526 = vmatpush3.bf16.msra.mxu0 %v587_v1  ;;  %v591_v5 = vld [vmem:[%s807_s1 + $0x88] sm:$0xff]   ;;  %v594_v8 = vld [vmem:[%s807_s1 + $0x90] sm:$0xff]  }
   0x4   :  { %563 = vmatprep.subr.bf16.mxu1 %v588_v2  ;;  %527 = vmatprep.subr.bf16.mxu0 %v589_v3  ;;  %v595_v9 = vld [vmem:[%s807_s1 + $0x58] sm:$0xff]   ;;  %v598_v12 = vld [vmem:[%s807_s1 + $0x60] sm:$0xff]   ;;  %v601_v15 = vld [vmem:[%s807_s1 + $0x68] sm:$0xff]  }
   0x5   :  { %564 = vmatpush3.bf16.msra.mxu1 %v588_v2  ;;  %v596_v10 = vld [vmem:[%s807_s1 + $0x18] sm:$0xff]   ;;  %v600_v13 = vld [vmem:[%s807_s1 + $0xa0] sm:$0xff]   ;;  %v603_v16 = vld [vmem:[%s807_s1 + $0xa8] sm:$0xff]  }
   0x6   :  { %565 = vmatprep.subr.bf16.mxu1 %v591_v5  ;;  %v597_v11 = vld [vmem:[%s807_s1 + $0x98] sm:$0xff]   ;;  %v599_v14 = vld [vmem:[%s807_s1 + $0x20] sm:$0xff]   ;;  %v602_v17 = vld [vmem:[%s807_s1 + $0x28] sm:$0xff]  }
   0x7   :  { %528 = vmatpush3.bf16.msra.mxu0 %v590_v4  ;;  %v604_v18 = vld [vmem:[%s807_s1 + $0x70] sm:$0xff]   ;;  %v607_v21 = vld [vmem:[%s807_s1 + $0x78] sm:$0xff]  }
   0x8   :  { %529 = vmatprep.subr.bf16.mxu0 %v592_v6  ;;  %v605_v19 = vld [vmem:[%s807_s1 + $0x30] sm:$0xff]   ;;  %v609_v22 = vld [vmem:[%s807_s1 + $0xb8] sm:$0xff]  }
   0x9   :  { %566 = vmatpush3.bf16.msra.mxu1 %v591_v5  ;;  %v606_v20 = vld [vmem:[%s807_s1 + $0xb0] sm:$0xff]   ;;  %v608_v25 = vld [vmem:[%s807_s1 + $0x38] sm:$0xff]  }
   0xa   :  { %567 = vmatprep.subr.bf16.mxu1 %v594_v8  ;;  %v612_v23 = vld [vmem:[%s806_s0 + $0x4] ss:$12 sps:$4 sm:$0xff]   ;;  %v613_v24 = vld [vmem:[%s806_s0 + $0x8] ss:$12 sps:$4 sm:$0xff]  }
   0xb   :  { %530 = vmatpush3.bf16.msra.mxu0 %v593_v7  ;;  %293 = vmatprep.mubr.bf16.mxu0 %v612_v23 }
   0xc   :  { %531 = vmatprep.subr.bf16.mxu0 %v595_v9  ;;  %579 = vmatprep.mubr.bf16.mxu1 %v613_v24 }
   0xd   :  { %568 = vmatpush3.bf16.msra.mxu1 %v594_v8 }
   0xe   :  { %569 = vmatprep.subr.bf16.mxu1 %v597_v11 }
   0xf   :  { %532 = vmatpush3.bf16.msra.mxu0 %v596_v10 }
  0x10   :  { %533 = vmatprep.subr.bf16.mxu0 %v598_v12 }
  0x11   :  { %570 = vmatpush3.bf16.msra.mxu1 %v597_v11 }
  0x12   :  { %571 = vmatprep.subr.bf16.mxu1 %v600_v13 }
  0x13   :  { %534 = vmatpush3.bf16.msra.mxu0 %v599_v14 }
  0x14   :  { %535 = vmatprep.subr.bf16.mxu0 %v601_v15 }
  0x15   :  { %572 = vmatpush3.bf16.msra.mxu1 %v600_v13 }
  0x16   :  { %573 = vmatprep.subr.bf16.mxu1 %v603_v16 }
  0x17   :  { %536 = vmatpush3.bf16.msra.mxu0 %v602_v17 }
  0x18   :  { %537 = vmatprep.subr.bf16.mxu0 %v604_v18 }
  0x19   :  { %574 = vmatpush3.bf16.msra.mxu1 %v603_v16 }
  0x1a   :  { %575 = vmatprep.subr.bf16.mxu1 %v606_v20 }
  0x1b   :  { %538 = vmatpush3.bf16.msra.mxu0 %v605_v19 }
  0x1c   :  { %539 = vmatprep.subr.bf16.mxu0 %v607_v21 }
  0x1d   :  { %10 = vsyncpa [#allocation3], 0  ;;  %576 = vmatpush3.bf16.msra.mxu1 %v606_v20  ;;  %v610_v26 = vld [vmem:[%s806_s0] ss:$12 sps:$4 sm:$0xff]   ;;  %v615_v27 = vld [vmem:[%s806_s0 + $0x1c] ss:$12 sps:$4 sm:$0xff]  }
  0x1e   :  { %577 = vmatprep.subr.bf16.mxu1 %v609_v22  ;;  %v614_v28 = vld [vmem:[%s806_s0 + $0x20] ss:$12 sps:$4 sm:$0xff]   ;;  %v617_v29 = vld [vmem:[%s806_s0 + $0x18] ss:$12 sps:$4 sm:$0xff]  }
  0x1f   :  { %540 = vmatpush3.bf16.msra.mxu0 %v608_v25  ;;  %v473_v32 = vld [vmem:[%s808_s2] ss:$0 sm:$0xff] }
  0x21   :  { %578 = vmatpush3.bf16.msra.mxu1 %v609_v22 }
  0x22   :  { %294 = vmatmul.mubr.bf16.vlgmr.msra.gmra.mrb[0].mxu0 %v610_v26 }
  0x23   :  { %301 = vmatprep.mubr.bf16.mxu0 %v615_v27 }
  0x24   :  { %580 = vmatmul.mubr.bf16.vlgmr.msra.gmra.mrb[0].mxu1 %v614_v28 }
  0x2a   :  { %302 = vmatmul.mubr.bf16.gmra.mrb[4].mxu0 %v617_v29  ;;  %v504_v29 = vld [vmem:[%s809_s3] ss:$0 sm:$0xff]  ;;  %s650_s3 = smov [#allocation2]  }
  0x2b   :  { %s462_s6 = sshll.u32 %s650_s3, 4  ;;  %s463_s6 = int_to_ptr.vmem [resolvable:$true] %s462_s6 }
  0x2c   :  { %p631_p1 = scmp.lt.s32.totalorder %s463_s6, %s463_s6 }
  0xf5   :  { %v541_v30 = vpop.f32.mrb[0].mxu0 }
  0xf6   :  { %v542_v31 = vpop.f32.mrb[1].mxu0 }
  0xf7   :  { %v543_v33 = vadd.f32 %v542_v31, %v541_v30  ;;  %v581_v34 = vpop.f32.mrb[0].mxu1  ;;  %v544_v35 = vpop.f32.mrb[2].mxu0 }
  0xf8   :  { %v344_v36 = vpop.f32.mrb[1].mxu1  ;;  %v545_v37 = vpop.f32.mrb[3].mxu0 }
  0xf9   :  { %v296_v38 = vadd.f32 %v543_v33, %v473_v32  ;;  %v546_v39 = vadd.f32 %v545_v37, %v544_v35  ;;  %v582_v40 = vpop.f32.mrb[2].mxu1  ;;  %v505_v35 = vld [vmem:[%s810_s4] ss:$0 sm:$0xff]  ;;  %s626_s4 = scalar_lea.vmem %s463_s6, 256 }
  0xfa   :  { %v347_v41 = vpop.f32.mrb[3].mxu1  ;;  %p627_p0 = scmp.ne.s32.totalorder %s463_s6, %s626_s4  ;;  %p632_p2 = scmp.lt.s32.totalorder %s626_s4, %s626_s4 }
  0xfb   :  { %v776_v42 = vadd.f32 %v344_v36, %v296_v38  ;;  %v299_v43 = vadd.f32 %v546_v39, %v473_v32 }
  0xfc   :  { %p633_p3 = por %p632_p2, %p631_p1 }
  0xfd   :  { %v778_v44 = vadd.f32 %v347_v41, %v299_v43  ;;  %v547_v45 = vpop.f32.mrb[4].mxu0  ;;  %359 = vadd.xlane.f32.xlu0 %v776_v42  ;;  %v367_v55 = vmul.f32 %v776_v42, %v776_v42 }
  0xfe   :  { %v548_v46 = vpop.f32.mrb[5].mxu0  ;;  %p634_p4 = pnand %p633_p3, %p627_p0 }
  0xff   :  { %v549_v47 = vadd.f32 %v548_v46, %v547_v45  ;;  %v550_v48 = vpop.f32.mrb[6].mxu0  ;;  %v368_v49 = vmul.f32 %v778_v44, %v778_v44 }
 0x100   :  { %v551_v50 = vpop.f32.mrb[7].mxu0 }
 0x101   :  { %v304_v51 = vadd.f32 %v549_v47, %v473_v32  ;;  %v552_v52 = vadd.f32 %v551_v50, %v550_v48  ;;  %373 = vadd.xlane.f32.xlu1 %v368_v49  ;;  %361 = vadd.xlane.f32.xlu0 %v778_v44 }
 0x103   :  { %v307_v53 = vadd.f32 %v552_v52, %v473_v32  ;;  %v353_v54 = vadd.f32 %v581_v34, %v304_v51 }
 0x105   :  { %363 = vadd.xlane.f32.xlu1 %v353_v54  ;;  %371 = vadd.xlane.f32.xlu0 %v367_v55  ;;  %v356_v56 = vadd.f32 %v582_v40, %v307_v53  ;;  %v369_v57 = vmul.f32 %v353_v54, %v353_v54 }
 0x107   :  { %v370_v58 = vmul.f32 %v356_v56, %v356_v56 }
 0x109   :  { %365 = vadd.xlane.f32.xlu1 %v356_v56  ;;  %375 = vadd.xlane.f32.xlu0 %v369_v57 }
 0x10d   :  { %377 = vadd.xlane.f32.xlu1 %v370_v58 }
 0x18a   :  { %v360_v59 = vpop.xlane.xlu0 %359 }
 0x18b   :  { %v379_v62 = vmul.f32 0.020833334, %v360_v59 }
 0x18d   :  { %v387_v4 = vmul.f32 %v379_v62, %v379_v62  ;;  %v399_v30 = vsub.f32 %v776_v42, %v379_v62 }
 0x18e   :  { %v374_v60 = vpop.xlane.xlu1 %373  ;;  %v362_v61 = vpop.xlane.xlu0 %361 }
 0x18f   :  { %v380_v63 = vmul.f32 0.020833334, %v362_v61  ;;  %v384_v0 = vmul.f32 0.020833334, %v374_v60 }
 0x191   :  { %v388_v1 = vmul.f32 %v380_v63, %v380_v63  ;;  %v400_v27 = vsub.f32 %v778_v44, %v380_v63 }
 0x192   :  { %v364_v2 = vpop.xlane.xlu1 %363  ;;  %v372_v3 = vpop.xlane.xlu0 %371 }
 0x193   :  { %v392_v5 = vsub.f32 %v384_v0, %v388_v1  ;;  %v383_v6 = vmul.f32 0.020833334, %v372_v3  ;;  %v381_v7 = vmul.f32 0.020833334, %v364_v2 }
 0x195   :  { %v396_v8 = vmax.f32 %v392_v5, 0.0  ;;  %v391_v9 = vsub.f32 %v383_v6, %v387_v4  ;;  %v389_v15 = vmul.f32 %v381_v7, %v381_v7  ;;  %v401_v37 = vsub.f32 %v353_v54, %v381_v7 }
 0x196   :  { %v366_v10 = vpop.xlane.xlu1 %365  ;;  %v376_v11 = vpop.xlane.xlu0 %375 }
 0x197   :  { %v404_v12 = vadd.f32 1e-05, %v396_v8  ;;  %v395_v13 = vmax.f32 %v391_v9, 0.0  ;;  %v382_v14 = vmul.f32 0.020833334, %v366_v10 }
 0x198   :  { %v385_v16 = vmul.f32 0.020833334, %v376_v11 }
 0x199   :  { %618 = vrsqrt.f32 %v404_v12  ;;  %v403_v17 = vadd.f32 1e-05, %v395_v13  ;;  %v390_v20 = vmul.f32 %v382_v14, %v382_v14  ;;  %v402_v43 = vsub.f32 %v356_v56, %v382_v14 }
 0x19a   :  { %v393_v18 = vsub.f32 %v385_v16, %v389_v15  ;;  %v378_v19 = vpop.xlane.xlu1 %377 }
 0x19b   :  { %620 = vrsqrt.f32 %v403_v17  ;;  %v386_v21 = vmul.f32 0.020833334, %v378_v19 }
 0x19c   :  { %v397_v22 = vmax.f32 %v393_v18, 0.0 }
 0x19d   :  { %v394_v23 = vsub.f32 %v386_v21, %v390_v20 }
 0x19e   :  { %v405_v24 = vadd.f32 1e-05, %v397_v22 }
 0x19f   :  { %v398_v25 = vmax.f32 %v394_v23, 0.0 }
 0x1a0   :  { %622 = vrsqrt.f32 %v405_v24 }
 0x1a1   :  { %v406_v26 = vadd.f32 1e-05, %v398_v25 }
 0x1a3   :  { %v619_v28 = vpop.eup %618  ;;  %624 = vrsqrt.f32 %v406_v26 }
 0x1a4   :  { %v412_v31 = vmul.f32 %v619_v28, %v400_v27 }
 0x1a5   :  { %v621_v32 = vpop.eup %620 }
 0x1a6   :  { %v423_v33 = vmul.f32 %v504_v29, %v412_v31  ;;  %v411_v34 = vmul.f32 %v621_v32, %v399_v30 }
 0x1a8   :  { %v422_v36 = vmul.f32 %v504_v29, %v411_v34  ;;  %v434_v39 = vadd.f32 %v505_v35, %v423_v33 }
 0x1aa   :  { %v623_v38 = vpop.eup %622  ;;  %v433_v40 = vadd.f32 %v505_v35, %v422_v36 }
 0x1ab   :  { %v413_v41 = vmul.f32 %v623_v38, %v401_v37 }
 0x1ac   :  { %v517_v44 = vpack.c.bf16 %v434_v39, %v433_v40 }
 0x1ad   :  { %v625_v45 = vpop.eup %624  ;;  %v424_v47 = vmul.f32 %v504_v29, %v413_v41 }
 0x1ae   :  { %v414_v46 = vmul.f32 %v625_v45, %v402_v43  ;;  %518 = vst [vmem:[#allocation2] sm:$0xff] %v517_v44  }
 0x1af   :  { %v435_v48 = vadd.f32 %v505_v35, %v424_v47 }
 0x1b0   :  { %v425_v42 = vmul.f32 %v504_v29, %v414_v46 }
 0x1b2   :  { %v436_v49 = vadd.f32 %v505_v35, %v425_v42 }
 0x1b4   :  { %v522_v50 = vpack.c.bf16 %v436_v49, %v435_v48 }
 0x1b6   :  { %524 = vst [vmem:[#allocation2 + $0x8] sm:$0xff] %v522_v50  }
 0x1b7   :  { %637 = shalt.err (!%p634_p4)
}
 0x1b8   :  { %s638_s9 = scalar_lea.hbm %s811_s5, 256 }
 0x1b9   :  { %p639_p5 = scmp.ne.s32.totalorder %s811_s5, %s638_s9  ;;  %p642_p6 = scmp.lt.u32.totalorder %s638_s9, %s811_s5 }
 0x1bb   :  { %p644_p7 = pnand %p642_p6, %p639_p5 }
 0x1bd   :  { %647 = shalt.err (!%p644_p7)
}
 0x1be   :  { %s651_s14 = smov 64   ;;  %s652_s15 = smov 4  }
 0x1bf   :  { %468 = dma.vmem_to_hbm [thread:$0]  %s463_s6, 256, %s811_s5, [#allocation3], %s651_s14, %s651_s14, %s652_s15  }
 0x1c0   :  { %648 = dma.done.wait [#allocation3], 256  }
 0x1c1   :  { %649 = vsyncadd [#allocation3], 4294967040 }
 0x1c2   :  { %472 = vsyncpa [#allocation3], 1 }

// kernel: cross_three_view_tokenize.4
= control target key start
LH: loop header
LB: loop body
LE: loop exit
PB: predicated region body
PF: predicated region fallthrough
CT: control target
= control target key end

     0   :  { %s1080_s0 = inlined_call_operand.vmem [shape: bf16[16,768], index: 0, kind: input, shape index: {}]   ;;  %s1081_s1 = inlined_call_operand.vmem [shape: bf16[768,128], index: 1, kind: input, shape index: {}]   ;;  %s1082_s2 = inlined_call_operand.vmem [shape: f32[1,128], index: 2, kind: input, shape index: {}]   ;;  %s1083_s3 = inlined_call_operand.vmem [shape: f32[1,128], index: 3, kind: input, shape index: {}]   ;;  %s1084_s4 = inlined_call_operand.vmem [shape: f32[1,128], index: 4, kind: input, shape index: {}]   ;;  %s1085_s5 = inlined_call_operand.hbm [shape: bf16[16,128], index: 5, kind: output, shape index: {}]  }
   0x1   :  { %v779_v0 = vld [vmem:[%s1081_s1 + $0x40] sm:$0xff]   ;;  %v783_v4 = vld [vmem:[%s1081_s1 + $0x48] sm:$0xff]   ;;  %v787_v8 = vld [vmem:[%s1081_s1 + $0x50] sm:$0xff]  }
   0x2   :  { %v780_v1 = vld [vmem:[%s1081_s1] sm:$0xff]   ;;  %710 = vmatprep.subr.bf16.mxu0 %v779_v0  ;;  %v784_v5 = vld [vmem:[%s1081_s1 + $0x8] sm:$0xff]   ;;  %v788_v9 = vld [vmem:[%s1081_s1 + $0x10] sm:$0xff]  }
   0x3   :  { %v781_v2 = vld [vmem:[%s1081_s1 + $0xc0] sm:$0xff]   ;;  %711 = vmatpush3.bf16.msra.mxu0 %v780_v1  ;;  %v785_v6 = vld [vmem:[%s1081_s1 + $0xc8] sm:$0xff]   ;;  %v789_v10 = vld [vmem:[%s1081_s1 + $0xd0] sm:$0xff]  }
   0x4   :  { %v782_v3 = vld [vmem:[%s1081_s1 + $0x80] sm:$0xff]   ;;  %732 = vmatprep.subr.bf16.mxu1 %v781_v2  ;;  %712 = vmatprep.subr.bf16.mxu0 %v783_v4  ;;  %v786_v7 = vld [vmem:[%s1081_s1 + $0x88] sm:$0xff]   ;;  %v790_v11 = vld [vmem:[%s1081_s1 + $0x90] sm:$0xff]  }
   0x5   :  { %733 = vmatpush3.bf16.msra.mxu1 %v782_v3  ;;  %v791_v12 = vld [vmem:[%s1081_s1 + $0x58] sm:$0xff]   ;;  %v795_v16 = vld [vmem:[%s1081_s1 + $0x60] sm:$0xff]   ;;  %v799_v20 = vld [vmem:[%s1081_s1 + $0x68] sm:$0xff]  }
   0x6   :  { %734 = vmatprep.subr.bf16.mxu1 %v785_v6  ;;  %v792_v13 = vld [vmem:[%s1081_s1 + $0x18] sm:$0xff]   ;;  %v796_v17 = vld [vmem:[%s1081_s1 + $0x20] sm:$0xff]   ;;  %v800_v21 = vld [vmem:[%s1081_s1 + $0x28] sm:$0xff]  }
   0x7   :  { %713 = vmatpush3.bf16.msra.mxu0 %v784_v5  ;;  %v793_v14 = vld [vmem:[%s1081_s1 + $0xd8] sm:$0xff]   ;;  %v797_v18 = vld [vmem:[%s1081_s1 + $0xe0] sm:$0xff]   ;;  %v801_v22 = vld [vmem:[%s1081_s1 + $0xe8] sm:$0xff]  }
   0x8   :  { %714 = vmatprep.subr.bf16.mxu0 %v787_v8  ;;  %v794_v15 = vld [vmem:[%s1081_s1 + $0x98] sm:$0xff]   ;;  %v798_v19 = vld [vmem:[%s1081_s1 + $0xa0] sm:$0xff]   ;;  %v802_v23 = vld [vmem:[%s1081_s1 + $0xa8] sm:$0xff]  }
   0x9   :  { %735 = vmatpush3.bf16.msra.mxu1 %v786_v7  ;;  %v803_v24 = vld [vmem:[%s1081_s1 + $0x70] sm:$0xff]   ;;  %v807_v28 = vld [vmem:[%s1081_s1 + $0x78] sm:$0xff]   ;;  %v814_v34 = vld [vmem:[%s1081_s1 + $0x140] sm:$0xff]  }
   0xa   :  { %736 = vmatprep.subr.bf16.mxu1 %v789_v10  ;;  %v804_v25 = vld [vmem:[%s1081_s1 + $0x30] sm:$0xff]   ;;  %v808_v29 = vld [vmem:[%s1081_s1 + $0x38] sm:$0xff]   ;;  %v815_v35 = vld [vmem:[%s1080_s0 + $0x8] ss:$24 sps:$4 sm:$0xff]  }
   0xb   :  { %715 = vmatpush3.bf16.msra.mxu0 %v788_v9  ;;  %v805_v26 = vld [vmem:[%s1081_s1 + $0xf0] sm:$0xff]   ;;  %v809_v30 = vld [vmem:[%s1081_s1 + $0xf8] sm:$0xff]   ;;  %v817_v36 = vld [vmem:[%s1080_s0 + $0xc] ss:$24 sps:$4 sm:$0xff]  }
   0xc   :  { %716 = vmatprep.subr.bf16.mxu0 %v791_v12  ;;  %v806_v27 = vld [vmem:[%s1081_s1 + $0xb0] sm:$0xff]   ;;  %v810_v31 = vld [vmem:[%s1080_s0] ss:$24 sps:$4 sm:$0xff]   ;;  %v812_v32 = vld [vmem:[%s1080_s0 + $0x4] ss:$24 sps:$4 sm:$0xff]   ;;  %522 = vmatprep.mubr.bf16.mxu1 %v817_v36 }
   0xd   :  { %737 = vmatpush3.bf16.msra.mxu1 %v790_v11  ;;  %v813_v33 = vld [vmem:[%s1081_s1 + $0xb8] sm:$0xff]   ;;  %481 = vmatprep.mubr.bf16.mxu0 %v812_v32  ;;  %v818_v37 = vld [vmem:[%s1081_s1 + $0x100] sm:$0xff]   ;;  %v819_v38 = vld [vmem:[%s1081_s1 + $0x148] sm:$0xff]  }
   0xe   :  { %738 = vmatprep.subr.bf16.mxu1 %v793_v14  ;;  %v820_v39 = vld [vmem:[%s1081_s1 + $0x108] sm:$0xff]   ;;  %v821_v40 = vld [vmem:[%s1081_s1 + $0x150] sm:$0xff]   ;;  %v823_v42 = vld [vmem:[%s1081_s1 + $0x158] sm:$0xff]  }
   0xf   :  { %717 = vmatpush3.bf16.msra.mxu0 %v792_v13  ;;  %v822_v41 = vld [vmem:[%s1081_s1 + $0x110] sm:$0xff]   ;;  %v824_v43 = vld [vmem:[%s1081_s1 + $0x118] sm:$0xff]   ;;  %v825_v44 = vld [vmem:[%s1081_s1 + $0x160] sm:$0xff]  }
  0x10   :  { %718 = vmatprep.subr.bf16.mxu0 %v795_v16  ;;  %v826_v45 = vld [vmem:[%s1081_s1 + $0x120] sm:$0xff]   ;;  %v827_v46 = vld [vmem:[%s1081_s1 + $0x168] sm:$0xff]  }
  0x11   :  { %739 = vmatpush3.bf16.msra.mxu1 %v794_v15  ;;  %v835_v47 = vld [vmem:[%s1080_s0 + $0x14] ss:$24 sps:$4 sm:$0xff]  }
  0x12   :  { %740 = vmatprep.subr.bf16.mxu1 %v797_v18 }
  0x13   :  { %719 = vmatpush3.bf16.msra.mxu0 %v796_v17 }
  0x14   :  { %720 = vmatprep.subr.bf16.mxu0 %v799_v20 }
  0x15   :  { %741 = vmatpush3.bf16.msra.mxu1 %v798_v19 }
  0x16   :  { %742 = vmatprep.subr.bf16.mxu1 %v801_v22 }
  0x17   :  { %721 = vmatpush3.bf16.msra.mxu0 %v800_v21 }
  0x18   :  { %722 = vmatprep.subr.bf16.mxu0 %v803_v24 }
  0x19   :  { %743 = vmatpush3.bf16.msra.mxu1 %v802_v23 }
  0x1a   :  { %744 = vmatprep.subr.bf16.mxu1 %v805_v26 }
  0x1b   :  { %723 = vmatpush3.bf16.msra.mxu0 %v804_v25 }
  0x1c   :  { %724 = vmatprep.subr.bf16.mxu0 %v807_v28 }
  0x1d   :  { %745 = vmatpush3.bf16.msra.mxu1 %v806_v27 }
  0x1e   :  { %746 = vmatprep.subr.bf16.mxu1 %v809_v30 }
  0x1f   :  { %725 = vmatpush3.bf16.msra.mxu0 %v808_v29 }
  0x20   :  { %754 = vmatprep.subr.bf16.mxu0 %v814_v34 }
  0x21   :  { %747 = vmatpush3.bf16.msra.mxu1 %v813_v33 }
  0x22   :  { %482 = vmatmul.mubr.bf16.vlgmr.msra.gmra.mrb[0].mxu0 %v810_v31 }
  0x23   :  { %755 = vmatpush3.bf16.msra.mxu0 %v818_v37 }
  0x24   :  { %523 = vmatmul.mubr.bf16.vlgmr.msra.gmra.mrb[0].mxu1 %v815_v35  ;;  %756 = vmatprep.subr.bf16.mxu0 %v819_v38 }
  0x27   :  { %757 = vmatpush3.bf16.msra.mxu0 %v820_v39 }
  0x28   :  { %758 = vmatprep.subr.bf16.mxu0 %v821_v40 }
  0x2b   :  { %759 = vmatpush3.bf16.msra.mxu0 %v822_v41 }
  0x2c   :  { %760 = vmatprep.subr.bf16.mxu0 %v823_v42 }
  0x2f   :  { %761 = vmatpush3.bf16.msra.mxu0 %v824_v43 }
  0x30   :  { %762 = vmatprep.subr.bf16.mxu0 %v825_v44 }
  0x31   :  { %10 = vsyncpa [#allocation3], 0  ;;  %563 = vmatprep.mubr.bf16.mxu0 %v835_v47  ;;  %v828_v48 = vld [vmem:[%s1081_s1 + $0x128] sm:$0xff]   ;;  %v829_v49 = vld [vmem:[%s1081_s1 + $0x170] sm:$0xff]   ;;  %s864_s29 = smov [#allocation2]  }
  0x32   :  { %v830_v50 = vld [vmem:[%s1081_s1 + $0x130] sm:$0xff]   ;;  %v831_v51 = vld [vmem:[%s1081_s1 + $0x178] sm:$0xff]   ;;  %v644_v55 = vld [vmem:[%s1082_s2] ss:$0 sm:$0xff]  ;;  %s633_s30 = sshll.u32 %s864_s29, 4  ;;  %s634_s30 = int_to_ptr.vmem [resolvable:$true] %s633_s30 }
  0x33   :  { %763 = vmatpush3.bf16.msra.mxu0 %v826_v45  ;;  %v832_v52 = vld [vmem:[%s1081_s1 + $0x138] sm:$0xff]   ;;  %v833_v53 = vld [vmem:[%s1080_s0 + $0x10] ss:$24 sps:$4 sm:$0xff]   ;;  %v699_v36 = vld [vmem:[%s1083_s3] ss:$0 sm:$0xff]  ;;  %s840_s6 = scalar_lea.vmem %s634_s30, 128  ;;  %p845_p1 = scmp.lt.s32.totalorder %s634_s30, %s634_s30 }
  0x34   :  { %764 = vmatprep.subr.bf16.mxu0 %v827_v46  ;;  %v700_v41 = vld [vmem:[%s1084_s4] ss:$0 sm:$0xff]  ;;  %p841_p0 = scmp.ne.s32.totalorder %s634_s30, %s840_s6  ;;  %p846_p2 = scmp.lt.s32.totalorder %s840_s6, %s840_s6 }
  0x36   :  { %p847_p3 = por %p846_p2, %p845_p1 }
  0x37   :  { %765 = vmatpush3.bf16.msra.mxu0 %v828_v48 }
  0x38   :  { %766 = vmatprep.subr.bf16.mxu0 %v829_v49  ;;  %p848_p4 = pnand %p847_p3, %p841_p0 }
  0x3b   :  { %767 = vmatpush3.bf16.msra.mxu0 %v830_v50 }
  0x3c   :  { %768 = vmatprep.subr.bf16.mxu0 %v831_v51 }
  0x3f   :  { %769 = vmatpush3.bf16.msra.mxu0 %v832_v52 }
  0x42   :  { %564 = vmatmul.mubr.bf16.vlgmr.msra.gmra.mrb[4].mxu0 %v833_v53 }
  0xf5   :  { %v726_v54 = vpop.f32.mrb[0].mxu0 }
  0xf6   :  { %v727_v56 = vpop.f32.mrb[1].mxu0 }
  0xf7   :  { %v728_v57 = vadd.f32 %v727_v56, %v726_v54  ;;  %v729_v58 = vpop.f32.mrb[2].mxu0  ;;  %v748_v59 = vpop.f32.mrb[0].mxu1 }
  0xf8   :  { %v730_v60 = vpop.f32.mrb[3].mxu0  ;;  %v749_v63 = vpop.f32.mrb[1].mxu1 }
  0xf9   :  { %v484_v61 = vadd.f32 %v728_v57, %v644_v55  ;;  %v731_v62 = vadd.f32 %v730_v60, %v729_v58  ;;  %v750_v0 = vadd.f32 %v749_v63, %v748_v59  ;;  %v751_v1 = vpop.f32.mrb[2].mxu1 }
  0xfa   :  { %v752_v3 = vpop.f32.mrb[3].mxu1 }
  0xfb   :  { %v487_v2 = vadd.f32 %v731_v62, %v644_v55  ;;  %v525_v4 = vadd.f32 %v750_v0, %v484_v61  ;;  %v753_v5 = vadd.f32 %v752_v3, %v751_v1 }
  0xfd   :  { %v528_v6 = vadd.f32 %v753_v5, %v487_v2 }
 0x115   :  { %v770_v7 = vpop.f32.mrb[4].mxu0 }
 0x116   :  { %v771_v8 = vpop.f32.mrb[5].mxu0 }
 0x117   :  { %v772_v9 = vadd.f32 %v771_v8, %v770_v7  ;;  %v773_v10 = vpop.f32.mrb[6].mxu0 }
 0x118   :  { %v774_v11 = vpop.f32.mrb[7].mxu0 }
 0x119   :  { %v566_v12 = vadd.f32 %v772_v9, %v525_v4  ;;  %v775_v13 = vadd.f32 %v774_v11, %v773_v10 }
 0x11b   :  { %v569_v14 = vadd.f32 %v775_v13, %v528_v6  ;;  %572 = vadd.xlane.f32.xlu0 %v566_v12  ;;  %v576_v15 = vmul.f32 %v566_v12, %v566_v12 }
 0x11d   :  { %578 = vadd.xlane.f32.xlu1 %v576_v15  ;;  %v577_v16 = vmul.f32 %v569_v14, %v569_v14 }
 0x11f   :  { %574 = vadd.xlane.f32.xlu0 %v569_v14 }
 0x121   :  { %580 = vadd.xlane.f32.xlu1 %v577_v16 }
 0x1a8   :  { %v573_v17 = vpop.xlane.xlu0 %572 }
 0x1a9   :  { %v582_v18 = vmul.f32 0.015625, %v573_v17 }
 0x1aa   :  { %v579_v19 = vpop.xlane.xlu1 %578 }
 0x1ab   :  { %v586_v20 = vmul.f32 %v582_v18, %v582_v18  ;;  %v584_v21 = vmul.f32 0.015625, %v579_v19  ;;  %v592_v33 = vsub.f32 %v566_v12, %v582_v18 }
 0x1ac   :  { %v575_v22 = vpop.xlane.xlu0 %574 }
 0x1ad   :  { %v588_v23 = vsub.f32 %v584_v21, %v586_v20  ;;  %v583_v24 = vmul.f32 0.015625, %v575_v22 }
 0x1ae   :  { %v581_v25 = vpop.xlane.xlu1 %580 }
 0x1af   :  { %v590_v26 = vmax.f32 %v588_v23, 0.0  ;;  %v587_v27 = vmul.f32 %v583_v24, %v583_v24  ;;  %v585_v28 = vmul.f32 0.015625, %v581_v25  ;;  %v593_v37 = vsub.f32 %v569_v14, %v583_v24 }
 0x1b1   :  { %v594_v29 = vadd.f32 1e-05, %v590_v26  ;;  %v589_v30 = vsub.f32 %v585_v28, %v587_v27 }
 0x1b3   :  { %836 = vrsqrt.f32 %v594_v29  ;;  %v591_v31 = vmax.f32 %v589_v30, 0.0 }
 0x1b5   :  { %v595_v32 = vadd.f32 1e-05, %v591_v31 }
 0x1b7   :  { %838 = vrsqrt.f32 %v595_v32 }
 0x1bd   :  { %v837_v34 = vpop.eup %836 }
 0x1be   :  { %v598_v35 = vmul.f32 %v837_v34, %v592_v33 }
 0x1c0   :  { %v607_v40 = vmul.f32 %v699_v36, %v598_v35 }
 0x1c1   :  { %v839_v38 = vpop.eup %838 }
 0x1c2   :  { %v599_v39 = vmul.f32 %v839_v38, %v593_v37  ;;  %v616_v43 = vadd.f32 %v700_v41, %v607_v40 }
 0x1c4   :  { %v608_v42 = vmul.f32 %v699_v36, %v599_v39 }
 0x1c6   :  { %v617_v44 = vadd.f32 %v700_v41, %v608_v42 }
 0x1c8   :  { %v708_v45 = vpack.c.bf16 %v617_v44, %v616_v43 }
 0x1ca   :  { %709 = vst [vmem:[#allocation2] sm:$0xff] %v708_v45  }
 0x1cb   :  { %851 = shalt.err (!%p848_p4)
}
 0x1cc   :  { %s852_s8 = scalar_lea.hbm %s1085_s5, 128 }
 0x1cd   :  { %p853_p5 = scmp.ne.s32.totalorder %s1085_s5, %s852_s8  ;;  %p856_p6 = scmp.lt.u32.totalorder %s852_s8, %s1085_s5 }
 0x1cf   :  { %p858_p7 = pnand %p856_p6, %p853_p5 }
 0x1d1   :  { %861 = shalt.err (!%p858_p7)
}
 0x1d2   :  { %s865_s12 = smov 64   ;;  %s866_s13 = smov 4  }
 0x1d3   :  { %639 = dma.vmem_to_hbm [thread:$0]  %s634_s30, 128, %s1085_s5, [#allocation3], %s865_s12, %s865_s12, %s866_s13  }
 0x1d4   :  { %862 = dma.done.wait [#allocation3], 128  }
 0x1d5   :  { %863 = vsyncadd [#allocation3], 4294967168 }
 0x1d6   :  { %643 = vsyncpa [#allocation3], 1 }

// kernel: cross_three_view_tokenize.3
= control target key start
LH: loop header
LB: loop body
LE: loop exit
PB: predicated region body
PF: predicated region fallthrough
CT: control target
= control target key end

     0   :  { %s1172_s0 = inlined_call_operand.vmem [shape: bf16[128,128], index: 0, kind: input, shape index: {}]   ;;  %s1173_s1 = inlined_call_operand.vmem [shape: bf16[128,128], index: 1, kind: input, shape index: {}]   ;;  %s1174_s2 = inlined_call_operand.vmem [shape: f32[1,128], index: 2, kind: input, shape index: {}]   ;;  %s1175_s3 = inlined_call_operand.vmem [shape: f32[1,128], index: 3, kind: input, shape index: {}]   ;;  %s1176_s4 = inlined_call_operand.vmem [shape: f32[1,128], index: 4, kind: input, shape index: {}]   ;;  %s1177_s5 = inlined_call_operand.hbm [shape: bf16[128,128], index: 5, kind: output, shape index: {}]  }
   0x1   :  { %v785_v0 = vld [vmem:[%s1173_s1] sm:$0xff]   ;;  %v786_v1 = vld [vmem:[%s1173_s1 + $0x8] sm:$0xff]   ;;  %v787_v2 = vld [vmem:[%s1173_s1 + $0x10] sm:$0xff]  }
   0x2   :  { %734 = vmatprep.subr.bf16.mxu0 %v785_v0  ;;  %766 = vmatprep.subr.bf16.mxu1 %v785_v0  ;;  %v788_v3 = vld [vmem:[%s1173_s1 + $0x18] sm:$0xff]   ;;  %v793_v4 = vld [vmem:[%s1172_s0] sm:$0xff]   ;;  %v790_v7 = vld [vmem:[%s1173_s1 + $0x28] sm:$0xff]  }
   0x3   :  { %735 = vmatpush3.bf16.msra.mxu0 %v785_v0  ;;  %774 = vmatpush3.bf16.msra.mxu1 %v785_v0  ;;  %v794_v5 = vld [vmem:[%s1172_s0 + $0x20] sm:$0xff]  }
   0x4   :  { %736 = vmatprep.subr.bf16.mxu0 %v786_v1  ;;  %767 = vmatprep.subr.bf16.mxu1 %v786_v1  ;;  %v789_v6 = vld [vmem:[%s1173_s1 + $0x20] sm:$0xff]  }
   0x5   :  { %750 = vmatprep.mubr.bf16.mxu0 %v793_v4  ;;  %758 = vmatprep.mubr.bf16.mxu1 %v794_v5 }
   0x7   :  { %737 = vmatpush3.bf16.msra.mxu0 %v786_v1  ;;  %775 = vmatpush3.bf16.msra.mxu1 %v786_v1 }
   0x8   :  { %738 = vmatprep.subr.bf16.mxu0 %v787_v2  ;;  %768 = vmatprep.subr.bf16.mxu1 %v787_v2 }
   0xb   :  { %739 = vmatpush3.bf16.msra.mxu0 %v787_v2  ;;  %776 = vmatpush3.bf16.msra.mxu1 %v787_v2 }
   0xc   :  { %740 = vmatprep.subr.bf16.mxu0 %v788_v3  ;;  %769 = vmatprep.subr.bf16.mxu1 %v788_v3 }
   0xf   :  { %741 = vmatpush3.bf16.msra.mxu0 %v788_v3  ;;  %777 = vmatpush3.bf16.msra.mxu1 %v788_v3 }
  0x10   :  { %742 = vmatprep.subr.bf16.mxu0 %v789_v6  ;;  %770 = vmatprep.subr.bf16.mxu1 %v789_v6 }
  0x11   :  { %10 = vsyncpa [#allocation3], 0  ;;  %v791_v8 = vld [vmem:[%s1173_s1 + $0x30] sm:$0xff]   ;;  %v792_v9 = vld [vmem:[%s1173_s1 + $0x38] sm:$0xff]  }
  0x12   :  { %v795_v10 = vld [vmem:[%s1172_s0 + $0x8] sm:$0xff]   ;;  %v797_v12 = vld [vmem:[%s1172_s0 + $0x10] sm:$0xff]   ;;  %v798_v14 = vld [vmem:[%s1172_s0 + $0x18] sm:$0xff]  }
  0x13   :  { %743 = vmatpush3.bf16.msra.mxu0 %v789_v6  ;;  %778 = vmatpush3.bf16.msra.mxu1 %v789_v6  ;;  %v796_v11 = vld [vmem:[%s1172_s0 + $0x28] sm:$0xff]   ;;  %v799_v13 = vld [vmem:[%s1172_s0 + $0x30] sm:$0xff]   ;;  %v800_v15 = vld [vmem:[%s1172_s0 + $0x38] sm:$0xff]  }
  0x14   :  { %744 = vmatprep.subr.bf16.mxu0 %v790_v7  ;;  %771 = vmatprep.subr.bf16.mxu1 %v790_v7  ;;  %v620_v16 = vld [vmem:[%s1174_s2] ss:$0 sm:$0xff] }
  0x17   :  { %745 = vmatpush3.bf16.msra.mxu0 %v790_v7  ;;  %779 = vmatpush3.bf16.msra.mxu1 %v790_v7 }
  0x18   :  { %746 = vmatprep.subr.bf16.mxu0 %v791_v8  ;;  %772 = vmatprep.subr.bf16.mxu1 %v791_v8 }
  0x1b   :  { %747 = vmatpush3.bf16.msra.mxu0 %v791_v8  ;;  %780 = vmatpush3.bf16.msra.mxu1 %v791_v8 }
  0x1c   :  { %748 = vmatprep.subr.bf16.mxu0 %v792_v9  ;;  %773 = vmatprep.subr.bf16.mxu1 %v792_v9 }
  0x1f   :  { %749 = vmatpush3.bf16.msra.mxu0 %v792_v9  ;;  %781 = vmatpush3.bf16.msra.mxu1 %v792_v9 }
  0x22   :  { %751 = vmatmul.mubr.bf16.vlgmr.msra.gmra.mrb[0].mxu0 %v795_v10  ;;  %759 = vmatmul.mubr.bf16.vlgmr.msra.gmra.mrb[0].mxu1 %v796_v11 }
  0x23   :  { %754 = vmatprep.mubr.bf16.mxu0 %v797_v12  ;;  %762 = vmatprep.mubr.bf16.mxu1 %v799_v13 }
  0x2a   :  { %755 = vmatmul.mubr.bf16.gmra.mrb[4].mxu0 %v798_v14  ;;  %763 = vmatmul.mubr.bf16.gmra.mrb[4].mxu1 %v800_v15 }
  0xf5   :  { %v752_v17 = vpop.f32.mrb[0].mxu0  ;;  %v760_v18 = vpop.f32.mrb[0].mxu1 }
  0xf6   :  { %v941_v19 = vadd.f32 %v752_v17, %v620_v16  ;;  %v943_v20 = vadd.f32 %v760_v18, %v620_v16  ;;  %v191_v21 = vpop.f32.mrb[1].mxu0  ;;  %v223_v22 = vpop.f32.mrb[1].mxu1 }
  0xf7   :  { %v753_v23 = vpop.f32.mrb[2].mxu0  ;;  %v761_v24 = vpop.f32.mrb[2].mxu1  ;;  %v947_v27 = vadd.f32 %v620_v16, %v191_v21  ;;  %v953_v31 = vadd.f32 %v620_v16, %v223_v22 }
  0xf8   :  { %274 = vadd.xlane.f32.xlu0 %v943_v20  ;;  %v226_v25 = vpop.f32.mrb[3].mxu1  ;;  %258 = vadd.xlane.f32.xlu1 %v941_v19  ;;  %v194_v26 = vpop.f32.mrb[3].mxu0  ;;  %v949_v28 = vadd.f32 %v753_v23, %v620_v16  ;;  %v955_v32 = vadd.f32 %v761_v24, %v620_v16  ;;  %v288_v40 = vmul.f32 %v941_v19, %v941_v19 }
  0xf9   :  { %v959_v39 = vadd.f32 %v620_v16, %v226_v25  ;;  %v296_v42 = vmul.f32 %v943_v20, %v943_v20  ;;  %v968_v43 = vadd.f32 %v620_v16, %v194_v26  ;;  %v286_v46 = vmul.f32 %v947_v27, %v947_v27 }
  0xfa   :  { %v289_v41 = vmul.f32 %v949_v28, %v949_v28  ;;  %v297_v44 = vmul.f32 %v955_v32, %v955_v32  ;;  %v294_v48 = vmul.f32 %v953_v31, %v953_v31 }
  0xfb   :  { %v287_v45 = vmul.f32 %v968_v43, %v968_v43  ;;  %v295_v47 = vmul.f32 %v959_v39, %v959_v39 }
  0xfc   :  { %260 = vadd.xlane.f32.xlu1 %v949_v28  ;;  %254 = vadd.xlane.f32.xlu0 %v947_v27 }
  0xfd   :  { %v756_v29 = vpop.f32.mrb[4].mxu0  ;;  %v764_v30 = vpop.f32.mrb[4].mxu1 }
  0xfe   :  { %v207_v33 = vpop.f32.mrb[5].mxu0  ;;  %v239_v34 = vpop.f32.mrb[5].mxu1  ;;  %v981_v49 = vadd.f32 %v756_v29, %v620_v16  ;;  %v987_v51 = vadd.f32 %v764_v30, %v620_v16 }
  0xff   :  { %v757_v35 = vpop.f32.mrb[6].mxu0  ;;  %v765_v36 = vpop.f32.mrb[6].mxu1  ;;  %v993_v53 = vadd.f32 %v620_v16, %v207_v33  ;;  %v999_v55 = vadd.f32 %v620_v16, %v239_v34 }
 0x100   :  { %276 = vadd.xlane.f32.xlu1 %v955_v32  ;;  %270 = vadd.xlane.f32.xlu0 %v953_v31  ;;  %v210_v37 = vpop.f32.mrb[7].mxu0  ;;  %v242_v38 = vpop.f32.mrb[7].mxu1  ;;  %v983_v50 = vadd.f32 %v757_v35, %v620_v16  ;;  %v989_v52 = vadd.f32 %v765_v36, %v620_v16  ;;  %v292_v58 = vmul.f32 %v981_v49, %v981_v49 }
 0x101   :  { %v995_v54 = vadd.f32 %v620_v16, %v210_v37  ;;  %v1001_v56 = vadd.f32 %v620_v16, %v242_v38  ;;  %v290_v60 = vmul.f32 %v993_v53, %v993_v53  ;;  %v298_v62 = vmul.f32 %v999_v55, %v999_v55 }
 0x102   :  { %v293_v57 = vmul.f32 %v983_v50, %v983_v50  ;;  %v301_v63 = vmul.f32 %v989_v52, %v989_v52  ;;  %v300_v0 = vmul.f32 %v987_v51, %v987_v51 }
 0x103   :  { %v291_v59 = vmul.f32 %v995_v54, %v995_v54  ;;  %v299_v61 = vmul.f32 %v1001_v56, %v1001_v56 }
 0x104   :  { %272 = vadd.xlane.f32.xlu1 %v959_v39  ;;  %306 = vadd.xlane.f32.xlu0 %v288_v40 }
 0x108   :  { %308 = vadd.xlane.f32.xlu1 %v289_v41  ;;  %322 = vadd.xlane.f32.xlu0 %v296_v42 }
 0x10c   :  { %324 = vadd.xlane.f32.xlu1 %v297_v44  ;;  %256 = vadd.xlane.f32.xlu0 %v968_v43 }
 0x110   :  { %304 = vadd.xlane.f32.xlu1 %v287_v45  ;;  %302 = vadd.xlane.f32.xlu0 %v286_v46 }
 0x114   :  { %320 = vadd.xlane.f32.xlu1 %v295_v47  ;;  %318 = vadd.xlane.f32.xlu0 %v294_v48 }
 0x118   :  { %268 = vadd.xlane.f32.xlu1 %v983_v50  ;;  %266 = vadd.xlane.f32.xlu0 %v981_v49 }
 0x11c   :  { %284 = vadd.xlane.f32.xlu1 %v989_v52  ;;  %282 = vadd.xlane.f32.xlu0 %v987_v51 }
 0x120   :  { %264 = vadd.xlane.f32.xlu1 %v995_v54  ;;  %262 = vadd.xlane.f32.xlu0 %v993_v53 }
 0x124   :  { %280 = vadd.xlane.f32.xlu1 %v1001_v56  ;;  %278 = vadd.xlane.f32.xlu0 %v999_v55 }
 0x128   :  { %316 = vadd.xlane.f32.xlu1 %v293_v57  ;;  %314 = vadd.xlane.f32.xlu0 %v292_v58 }
 0x12c   :  { %312 = vadd.xlane.f32.xlu1 %v291_v59  ;;  %310 = vadd.xlane.f32.xlu0 %v290_v60 }
 0x130   :  { %328 = vadd.xlane.f32.xlu1 %v299_v61  ;;  %326 = vadd.xlane.f32.xlu0 %v298_v62 }
 0x134   :  { %332 = vadd.xlane.f32.xlu1 %v301_v63  ;;  %330 = vadd.xlane.f32.xlu0 %v300_v0 }
 0x185   :  { %v275_v1 = vpop.xlane.xlu0 %274  ;;  %v259_v2 = vpop.xlane.xlu1 %258 }
 0x186   :  { %v336_v7 = vmul.f32 0.03125, %v259_v2  ;;  %v1021_v8 = vmul.f32 0.03125, %v275_v1 }
 0x188   :  { %v368_v11 = vmul.f32 %v336_v7, %v336_v7  ;;  %v376_v15 = vmul.f32 %v1021_v8, %v1021_v8 }
 0x189   :  { %v261_v3 = vpop.xlane.xlu1 %260  ;;  %v255_v4 = vpop.xlane.xlu0 %254 }
 0x18a   :  { %v1023_v12 = vmul.f32 0.03125, %v261_v3  ;;  %v1031_v30 = vmul.f32 0.03125, %v255_v4 }
 0x18c   :  { %v369_v21 = vmul.f32 %v1023_v12, %v1023_v12  ;;  %v366_v45 = vmul.f32 %v1031_v30, %v1031_v30 }
 0x18d   :  { %v277_v5 = vpop.xlane.xlu1 %276  ;;  %v271_v6 = vpop.xlane.xlu0 %270 }
 0x18e   :  { %v1027_v16 = vmul.f32 0.03125, %v277_v5  ;;  %v1043_v61 = vmul.f32 0.03125, %v271_v6 }
 0x190   :  { %v377_v33 = vmul.f32 %v1027_v16, %v1027_v16 }
 0x191   :  { %v273_v9 = vpop.xlane.xlu1 %272  ;;  %v307_v10 = vpop.xlane.xlu0 %306 }
 0x192   :  { %v352_v13 = vmul.f32 0.03125, %v307_v10  ;;  %v1039_v46 = vmul.f32 0.03125, %v273_v9  ;;  %v416_v10 = vsub.f32 %v941_v19, %v336_v7  ;;  %v417_v19 = vsub.f32 %v949_v28, %v1023_v12  ;;  %v1067_v28 = vld [vmem:[%s1176_s4] ss:$0 sm:$0xff]  ;;  %s857_s4 = smov [#allocation2]  }
 0x193   :  { %s609_s27 = sshll.u32 %s857_s4, 4  ;;  %s610_s27 = int_to_ptr.vmem [resolvable:$true] %s609_s27 }
 0x194   :  { %v384_v14 = vsub.f32 %v352_v13, %v368_v11  ;;  %v375_v1 = vmul.f32 %v1039_v46, %v1039_v46  ;;  %v374_v11 = vmul.f32 %v1043_v61, %v1043_v61  ;;  %s833_s28 = scalar_lea.vmem %s610_s27, 1024  ;;  %p838_p1 = scmp.lt.s32.totalorder %s610_s27, %s610_s27 }
 0x195   :  { %v309_v17 = vpop.xlane.xlu1 %308  ;;  %v323_v18 = vpop.xlane.xlu0 %322  ;;  %p834_p0 = scmp.ne.s32.totalorder %s610_s27, %s833_s28  ;;  %p839_p2 = scmp.lt.s32.totalorder %s833_s28, %s833_s28 }
 0x196   :  { %v400_v22 = vmax.f32 %v384_v14, 0.0  ;;  %v353_v23 = vmul.f32 0.03125, %v309_v17  ;;  %v360_v24 = vmul.f32 0.03125, %v323_v18 }
 0x197   :  { %p840_p3 = por %p839_p2, %p838_p1 }
 0x198   :  { %v432_v25 = vadd.f32 1e-05, %v400_v22  ;;  %v385_v26 = vsub.f32 %v353_v23, %v369_v21  ;;  %v392_v29 = vsub.f32 %v360_v24, %v376_v15  ;;  %v1053_v24 = vld [vmem:[%s1175_s3] ss:$0 sm:$0xff] }
 0x199   :  { %v325_v34 = vpop.xlane.xlu1 %324  ;;  %v257_v35 = vpop.xlane.xlu0 %256  ;;  %p841_p4 = pnand %p840_p3, %p834_p0 }
 0x19a   :  { %801 = vrsqrt.f32 %v432_v25  ;;  %v401_v36 = vmax.f32 %v385_v26, 0.0  ;;  %v408_v37 = vmax.f32 %v392_v29, 0.0  ;;  %v361_v38 = vmul.f32 0.03125, %v325_v34 }
 0x19b   :  { %v1035_v40 = vmul.f32 0.03125, %v257_v35  ;;  %v424_v29 = vsub.f32 %v943_v20, %v1021_v8  ;;  %v425_v20 = vsub.f32 %v955_v32, %v1027_v16  ;;  %v414_v16 = vsub.f32 %v947_v27, %v1031_v30 }
 0x19c   :  { %v433_v41 = vadd.f32 1e-05, %v401_v36  ;;  %v440_v42 = vadd.f32 1e-05, %v408_v37  ;;  %v393_v44 = vsub.f32 %v361_v38, %v377_v33 }
 0x19d   :  { %v367_v47 = vmul.f32 %v1035_v40, %v1035_v40  ;;  %v305_v48 = vpop.xlane.xlu1 %304  ;;  %v303_v57 = vpop.xlane.xlu0 %302 }
 0x19e   :  { %803 = vrsqrt.f32 %v433_v41  ;;  %v409_v58 = vmax.f32 %v393_v44, 0.0  ;;  %v351_v59 = vmul.f32 0.03125, %v305_v48  ;;  %v350_v60 = vmul.f32 0.03125, %v303_v57 }
 0x19f   :  { %805 = vrsqrt.f32 %v440_v42 }
 0x1a0   :  { %v441_v62 = vadd.f32 1e-05, %v409_v58  ;;  %v383_v63 = vsub.f32 %v351_v59, %v367_v47  ;;  %v382_v0 = vsub.f32 %v350_v60, %v366_v45 }
 0x1a1   :  { %v321_v2 = vpop.xlane.xlu1 %320  ;;  %v319_v3 = vpop.xlane.xlu0 %318 }
 0x1a2   :  { %807 = vrsqrt.f32 %v441_v62  ;;  %v399_v4 = vmax.f32 %v383_v63, 0.0  ;;  %v398_v5 = vmax.f32 %v382_v0, 0.0  ;;  %v359_v9 = vmul.f32 0.03125, %v321_v2 }
 0x1a3   :  { %v358_v6 = vmul.f32 0.03125, %v319_v3  ;;  %v415_v62 = vsub.f32 %v968_v43, %v1035_v40  ;;  %v423_v43 = vsub.f32 %v959_v39, %v1039_v46 }
 0x1a4   :  { %v802_v13 = vpop.eup %801  ;;  %v431_v14 = vadd.f32 1e-05, %v399_v4  ;;  %v430_v15 = vadd.f32 1e-05, %v398_v5  ;;  %v391_v17 = vsub.f32 %v359_v9, %v375_v1 }
 0x1a5   :  { %v464_v18 = vmul.f32 %v802_v13, %v416_v10  ;;  %v390_v21 = vsub.f32 %v358_v6, %v374_v11  ;;  %v269_v22 = vpop.xlane.xlu1 %268  ;;  %v267_v23 = vpop.xlane.xlu0 %266  ;;  %v422_v11 = vsub.f32 %v953_v31, %v1043_v61 }
 0x1a6   :  { %809 = vrsqrt.f32 %v431_v14  ;;  %v407_v25 = vmax.f32 %v391_v17, 0.0  ;;  %v1080_v63 = vmul.f32 0.03125, %v269_v22  ;;  %v1084_v4 = vmul.f32 0.03125, %v267_v23 }
 0x1a7   :  { %811 = vrsqrt.f32 %v430_v15  ;;  %v406_v7 = vmax.f32 %v390_v21, 0.0  ;;  %v487_v35 = vmul.f32 %v1053_v24, %v464_v18 }
 0x1a8   :  { %v804_v26 = vpop.eup %803  ;;  %v439_v33 = vadd.f32 1e-05, %v407_v25  ;;  %v373_v13 = vmul.f32 %v1080_v63, %v1080_v63  ;;  %v372_v39 = vmul.f32 %v1084_v4, %v1084_v4 }
 0x1a9   :  { %v806_v34 = vpop.eup %805  ;;  %v465_v36 = vmul.f32 %v804_v26, %v417_v19  ;;  %v438_v37 = vadd.f32 1e-05, %v406_v7  ;;  %v1060_v38 = vpop.xlane.xlu1 %284  ;;  %v510_v44 = vadd.f32 %v1067_v28, %v487_v35 }
 0x1aa   :  { %v1062_v41 = vpop.xlane.xlu0 %282  ;;  %v472_v12 = vmul.f32 %v806_v34, %v424_v29  ;;  %813 = vrsqrt.f32 %v439_v33 }
 0x1ab   :  { %v488_v8 = vmul.f32 %v1053_v24, %v465_v36  ;;  %815 = vrsqrt.f32 %v438_v37 }
 0x1ac   :  { %v808_v42 = vpop.eup %807  ;;  %v495_v47 = vmul.f32 %v1053_v24, %v472_v12 }
 0x1ad   :  { %v511_v45 = vadd.f32 %v1067_v28, %v488_v8  ;;  %v473_v48 = vmul.f32 %v808_v42, %v425_v20  ;;  %v265_v57 = vpop.xlane.xlu1 %264 }
 0x1ae   :  { %v263_v58 = vpop.xlane.xlu0 %262  ;;  %v518_v1 = vadd.f32 %v1067_v28, %v495_v47  ;;  %v1097_v46 = vmul.f32 0.03125, %v265_v57 }
 0x1af   :  { %v679_v59 = vpack.c.bf16 %v511_v45, %v510_v44  ;;  %v496_v60 = vmul.f32 %v1053_v24, %v473_v48  ;;  %v1101_v19 = vmul.f32 0.03125, %v263_v58 }
 0x1b0   :  { %v810_v32 = vpop.eup %809  ;;  %v371_v35 = vmul.f32 %v1097_v46, %v1097_v46 }
 0x1b1   :  { %v812_v0 = vpop.eup %811  ;;  %711 = vst [vmem:[#allocation2 + $0x8] sm:$0xff] %v679_v59   ;;  %v519_v2 = vadd.f32 %v1067_v28, %v496_v60  ;;  %v463_v3 = vmul.f32 %v810_v32, %v415_v62  ;;  %v281_v5 = vpop.xlane.xlu1 %280  ;;  %v370_v47 = vmul.f32 %v1101_v19, %v1101_v19  ;;  %v1115_v62 = vmul.f32 0.03125, %v1060_v38 }
 0x1b2   :  { %v279_v9 = vpop.xlane.xlu0 %278  ;;  %v462_v10 = vmul.f32 %v812_v0, %v414_v16  ;;  %v1107_v36 = vmul.f32 0.03125, %v281_v5 }
 0x1b3   :  { %v699_v40 = vpack.c.bf16 %v519_v2, %v518_v1  ;;  %v486_v27 = vmul.f32 %v1053_v24, %v463_v3  ;;  %v1109_v37 = vmul.f32 0.03125, %v279_v9 }
 0x1b4   :  { %v814_v30 = vpop.eup %813  ;;  %v485_v6 = vmul.f32 %v1053_v24, %v462_v10  ;;  %v379_v32 = vmul.f32 %v1107_v36, %v1107_v36  ;;  %v1122_v10 = vmul.f32 0.03125, %v1062_v41 }
 0x1b5   :  { %v816_v14 = vpop.eup %815  ;;  %715 = vst [vmem:[#allocation2 + $0x28] sm:$0xff] %v699_v40   ;;  %v509_v15 = vadd.f32 %v1067_v28, %v486_v27  ;;  %v471_v17 = vmul.f32 %v814_v30, %v423_v43  ;;  %v317_v18 = vpop.xlane.xlu1 %316  ;;  %v378_v16 = vmul.f32 %v1109_v37, %v1109_v37  ;;  %v381_v30 = vmul.f32 %v1115_v62, %v1115_v62 }
 0x1b6   :  { %v315_v21 = vpop.xlane.xlu0 %314  ;;  %v508_v22 = vadd.f32 %v1067_v28, %v485_v6  ;;  %v470_v31 = vmul.f32 %v816_v14, %v422_v11  ;;  %v357_v61 = vmul.f32 0.03125, %v317_v18 }
 0x1b7   :  { %v356_v23 = vmul.f32 0.03125, %v315_v21  ;;  %v494_v25 = vmul.f32 %v1053_v24, %v471_v17 }
 0x1b8   :  { %v674_v7 = vpack.c.bf16 %v509_v15, %v508_v22  ;;  %v493_v26 = vmul.f32 %v1053_v24, %v470_v31  ;;  %v389_v29 = vsub.f32 %v357_v61, %v373_v13 }
 0x1b9   :  { %v388_v33 = vsub.f32 %v356_v23, %v372_v39  ;;  %v517_v34 = vadd.f32 %v1067_v28, %v494_v25  ;;  %v313_v12 = vpop.xlane.xlu1 %312  ;;  %v380_v39 = vmul.f32 %v1122_v10, %v1122_v10  ;;  %v421_v23 = vsub.f32 %v983_v50, %v1080_v63 }
 0x1ba   :  { %v311_v20 = vpop.xlane.xlu0 %310  ;;  %675 = vst [vmem:[#allocation2] sm:$0xff] %v674_v7   ;;  %v516_v8 = vadd.f32 %v1067_v28, %v493_v26  ;;  %v405_v42 = vmax.f32 %v389_v29, 0.0  ;;  %v355_v45 = vmul.f32 0.03125, %v313_v12  ;;  %v420_v26 = vsub.f32 %v981_v49, %v1084_v4 }
 0x1bb   :  { %v404_v44 = vmax.f32 %v388_v33, 0.0  ;;  %v354_v48 = vmul.f32 0.03125, %v311_v20  ;;  %v419_v20 = vsub.f32 %v995_v54, %v1097_v46  ;;  %v418_v50 = vsub.f32 %v993_v53, %v1101_v19 }
 0x1bc   :  { %v694_v57 = vpack.c.bf16 %v517_v34, %v516_v8  ;;  %v437_v58 = vadd.f32 1e-05, %v405_v42  ;;  %v387_v60 = vsub.f32 %v355_v45, %v371_v35 }
 0x1bd   :  { %v436_v59 = vadd.f32 1e-05, %v404_v44  ;;  %v386_v0 = vsub.f32 %v354_v48, %v370_v47  ;;  %v329_v1 = vpop.xlane.xlu1 %328  ;;  %v427_v48 = vsub.f32 %v1001_v56, %v1107_v36  ;;  %v429_v56 = vsub.f32 %v989_v52, %v1115_v62 }
 0x1be   :  { %v327_v2 = vpop.xlane.xlu0 %326  ;;  %714 = vst [vmem:[#allocation2 + $0x20] sm:$0xff] %v694_v57   ;;  %817 = vrsqrt.f32 %v437_v58  ;;  %v403_v3 = vmax.f32 %v387_v60, 0.0  ;;  %v363_v5 = vmul.f32 0.03125, %v329_v1  ;;  %v426_v57 = vsub.f32 %v999_v55, %v1109_v37 }
 0x1bf   :  { %v362_v9 = vmul.f32 0.03125, %v327_v2  ;;  %819 = vrsqrt.f32 %v436_v59  ;;  %v402_v38 = vmax.f32 %v386_v0, 0.0  ;;  %v428_v55 = vsub.f32 %v987_v51, %v1122_v10 }
 0x1c0   :  { %v435_v43 = vadd.f32 1e-05, %v403_v3  ;;  %v395_v40 = vsub.f32 %v363_v5, %v379_v32 }
 0x1c1   :  { %v394_v27 = vsub.f32 %v362_v9, %v378_v16  ;;  %v434_v11 = vadd.f32 1e-05, %v402_v38  ;;  %v333_v6 = vpop.xlane.xlu1 %332 }
 0x1c2   :  { %v331_v13 = vpop.xlane.xlu0 %330  ;;  %821 = vrsqrt.f32 %v435_v43  ;;  %v411_v14 = vmax.f32 %v395_v40, 0.0  ;;  %v365_v17 = vmul.f32 0.03125, %v333_v6 }
 0x1c3   :  { %v410_v15 = vmax.f32 %v394_v27, 0.0  ;;  %823 = vrsqrt.f32 %v434_v11  ;;  %v364_v41 = vmul.f32 0.03125, %v331_v13 }
 0x1c4   :  { %v443_v18 = vadd.f32 1e-05, %v411_v14  ;;  %v397_v22 = vsub.f32 %v365_v17, %v381_v30 }
 0x1c5   :  { %v442_v21 = vadd.f32 1e-05, %v410_v15  ;;  %v396_v31 = vsub.f32 %v364_v41, %v380_v39 }
 0x1c6   :  { %825 = vrsqrt.f32 %v443_v18  ;;  %v413_v61 = vmax.f32 %v397_v22, 0.0 }
 0x1c7   :  { %827 = vrsqrt.f32 %v442_v21  ;;  %v412_v25 = vmax.f32 %v396_v31, 0.0 }
 0x1c8   :  { %v818_v7 = vpop.eup %817  ;;  %v445_v29 = vadd.f32 1e-05, %v413_v61 }
 0x1c9   :  { %v820_v33 = vpop.eup %819  ;;  %v469_v34 = vmul.f32 %v818_v7, %v421_v23  ;;  %v444_v35 = vadd.f32 1e-05, %v412_v25 }
 0x1ca   :  { %v468_v12 = vmul.f32 %v820_v33, %v420_v26  ;;  %829 = vrsqrt.f32 %v445_v29 }
 0x1cb   :  { %v492_v8 = vmul.f32 %v1053_v24, %v469_v34  ;;  %831 = vrsqrt.f32 %v444_v35 }
 0x1cc   :  { %v822_v42 = vpop.eup %821  ;;  %v491_v63 = vmul.f32 %v1053_v24, %v468_v12 }
 0x1cd   :  { %v824_v44 = vpop.eup %823  ;;  %v515_v49 = vadd.f32 %v1067_v28, %v492_v8  ;;  %v467_v4 = vmul.f32 %v822_v42, %v419_v20 }
 0x1ce   :  { %v514_v45 = vadd.f32 %v1067_v28, %v491_v63  ;;  %v466_v47 = vmul.f32 %v824_v44, %v418_v50 }
 0x1cf   :  { %v490_v54 = vmul.f32 %v1053_v24, %v467_v4 }
 0x1d0   :  { %v826_v46 = vpop.eup %825  ;;  %v689_v58 = vpack.c.bf16 %v515_v49, %v514_v45  ;;  %v489_v53 = vmul.f32 %v1053_v24, %v466_v47 }
 0x1d1   :  { %v828_v19 = vpop.eup %827  ;;  %v513_v59 = vadd.f32 %v1067_v28, %v490_v54  ;;  %v475_v60 = vmul.f32 %v826_v46, %v427_v48 }
 0x1d2   :  { %713 = vst [vmem:[#allocation2 + $0x18] sm:$0xff] %v689_v58   ;;  %v512_v32 = vadd.f32 %v1067_v28, %v489_v53  ;;  %v474_v16 = vmul.f32 %v828_v19, %v426_v57 }
 0x1d3   :  { %v498_v36 = vmul.f32 %v1053_v24, %v475_v60 }
 0x1d4   :  { %v830_v0 = vpop.eup %829  ;;  %v684_v37 = vpack.c.bf16 %v513_v59, %v512_v32  ;;  %v497_v1 = vmul.f32 %v1053_v24, %v474_v16 }
 0x1d5   :  { %v832_v2 = vpop.eup %831  ;;  %v521_v3 = vadd.f32 %v1067_v28, %v498_v36  ;;  %v477_v5 = vmul.f32 %v830_v0, %v429_v56 }
 0x1d6   :  { %712 = vst [vmem:[#allocation2 + $0x10] sm:$0xff] %v684_v37   ;;  %v520_v9 = vadd.f32 %v1067_v28, %v497_v1  ;;  %v476_v38 = vmul.f32 %v832_v2, %v428_v55 }
 0x1d7   :  { %v500_v43 = vmul.f32 %v1053_v24, %v477_v5 }
 0x1d8   :  { %v704_v52 = vpack.c.bf16 %v521_v3, %v520_v9  ;;  %v499_v62 = vmul.f32 %v1053_v24, %v476_v38 }
 0x1d9   :  { %v523_v51 = vadd.f32 %v1067_v28, %v500_v43 }
 0x1da   :  { %716 = vst [vmem:[#allocation2 + $0x30] sm:$0xff] %v704_v52   ;;  %v522_v10 = vadd.f32 %v1067_v28, %v499_v62 }
 0x1dc   :  { %v709_v40 = vpack.c.bf16 %v523_v51, %v522_v10 }
 0x1de   :  { %717 = vst [vmem:[#allocation2 + $0x38] sm:$0xff] %v709_v40  }
 0x1df   :  { %844 = shalt.err (!%p841_p4)
}
 0x1e0   :  { %s845_s6 = scalar_lea.hbm %s1177_s5, 1024 }
 0x1e1   :  { %p846_p5 = scmp.ne.s32.totalorder %s1177_s5, %s845_s6  ;;  %p849_p6 = scmp.lt.u32.totalorder %s845_s6, %s1177_s5 }
 0x1e3   :  { %p851_p7 = pnand %p849_p6, %p846_p5 }
 0x1e5   :  { %854 = shalt.err (!%p851_p7)
}
 0x1e6   :  { %s858_s11 = smov 64   ;;  %s859_s12 = smov 4  }
 0x1e7   :  { %615 = dma.vmem_to_hbm [thread:$0]  %s610_s27, 1024, %s1177_s5, [#allocation3], %s858_s11, %s858_s11, %s859_s12  }
 0x1e8   :  { %855 = dma.done.wait [#allocation3], 1024  }
 0x1e9   :  { %856 = vsyncadd [#allocation3], 4294966272 }
 0x1ea   :  { %619 = vsyncpa [#allocation3], 1 }

</bundles_post_ra>
